<compile_context>
chip_gen: v7x
topology: tpu7x:2x2x1
jax: 0.10.0
libtpu: 0.0.40
codegen_flags: <defaults>
</compile_context>

<pallas_src>
import functools

import jax
import jax.numpy as jnp
from jax import lax
from jax.experimental import pallas as pl
from jax.experimental.pallas import tpu as pltpu

K_SIZE, STRIDE, PAD = 8, 4, 2          # UpBlock defaults
PH = STRIDE                            # output phases per spatial dim (4 -> 16 total)
TAPS = K_SIZE // STRIDE + 1            # input taps per dim for the phase conv (3)
DK_PAD = 1                             # input padding of the phase-conv window


def _round_up(x, m):
    return (x + m - 1) // m * m


# ----------------------------- Pallas kernels --------------------------------
def _gemm_bias_prelu_kernel(alpha_ref, w_ref, b_ref, p_ref, o_ref):
    # w: (F, K) bf16, p: (K, tn) bf16, b: (F, 1) f32, out: (F, tn) f32
    acc = jnp.dot(w_ref[...], p_ref[...], preferred_element_type=jnp.float32)
    acc = acc + b_ref[...]
    a = alpha_ref[0]                                   # PReLU slope (scalar, SMEM)
    o_ref[...] = jnp.where(acc >= 0.0, acc, a * acc).astype(o_ref.dtype)


def _gemm_bias_prelu_res_kernel(alpha_ref, w_ref, b_ref, p_ref, e_ref, o_ref, *,
                                combine):
    acc = jnp.dot(w_ref[...], p_ref[...], preferred_element_type=jnp.float32)
    acc = acc + b_ref[...]
    a = alpha_ref[0]
    act = jnp.where(acc >= 0.0, acc, a * acc)
    o_ref[...] = (act + combine * e_ref[...]).astype(o_ref.dtype)


def _fused_gemm(alpha, w_t, bias_col, pats_t, extra=None, combine=1.0, tile_n=512):
    """out[:F, :M] = prelu(w_t @ pats_t + bias_col) [+ combine * extra]  (transposed GEMM).

    w_t: (F, K), pats_t: (K, M), bias_col: (F, 1), extra: (F, M) or None.
    Features (F) live on sublanes, pixel index (M) on lanes -> lane-dense loads/stores.
    """
    F, K = w_t.shape
    _, M = pats_t.shape

    Fp = _round_up(F, 16)                  # sublane-safe for bf16 packing
    Kp = _round_up(K, 16)
    tn = min(tile_n, _round_up(M, 128))
    Mp = _round_up(M, tn)

    w_b = jnp.pad(w_t.astype(jnp.bfloat16), ((0, Fp - F), (0, Kp - K)))
    p_b = jnp.pad(pats_t.astype(jnp.bfloat16), ((0, Kp - K), (0, Mp - M)))
    b_c = jnp.pad(bias_col.astype(jnp.float32), ((0, Fp - F), (0, 0)))
    alpha = alpha.astype(jnp.float32).reshape(1)

    grid = (Mp // tn,)
    in_specs = [
        pl.BlockSpec(memory_space=pltpu.MemorySpace.SMEM),      # alpha (1,)
        pl.BlockSpec((Fp, Kp), lambda i: (0, 0)),               # weight (whole)
        pl.BlockSpec((Fp, 1), lambda i: (0, 0)),                # bias column
        pl.BlockSpec((Kp, tn), lambda i: (0, i)),               # patches tile
    ]
    out_spec = pl.BlockSpec((Fp, tn), lambda i: (0, i))
    cparams = pltpu.CompilerParams(dimension_semantics=("parallel",))

    if extra is None:
        out = pl.pallas_call(
            _gemm_bias_prelu_kernel,
            out_shape=jax.ShapeDtypeStruct((Fp, Mp), jnp.float32),
            grid=grid, in_specs=in_specs, out_specs=out_spec,
            compiler_params=cparams,
        )(alpha, w_b, b_c, p_b)
    else:
        e = jnp.pad(extra.astype(jnp.float32), ((0, Fp - F), (0, Mp - M)))
        kernel = functools.partial(_gemm_bias_prelu_res_kernel, combine=combine)
        out = pl.pallas_call(
            kernel,
            out_shape=jax.ShapeDtypeStruct((Fp, Mp), jnp.float32),
            grid=grid,
            in_specs=in_specs + [pl.BlockSpec((Fp, tn), lambda i: (0, i))],
            out_specs=out_spec,
            compiler_params=cparams,
        )(alpha, w_b, b_c, p_b, e)
    return out[:F, :M]


# ------------------------------- JAX glue ------------------------------------
def _deconv_phase_weight_t(w):
    """ConvTranspose2d weight (Cin, Cout, 8, 8) -> (16*Cout, 9*Cin) phase-conv matrix.

    Rows ordered (ry, rx, co), cols ordered (ty, tx, ci).  Output phase (ry, rx) at input
    window offset (ty, tx) (window = input rows qy-1..qy+1) uses kernel tap
    ky = ry + PAD + STRIDE*DK_PAD - STRIDE*ty  (zeroed if outside [0, K_SIZE))."""
    Cin, Cout = w.shape[0], w.shape[1]
    ty = jnp.arange(TAPS)
    ry = jnp.arange(PH)
    ky = ry[None, :] + (PAD + STRIDE * DK_PAD) - STRIDE * ty[:, None]   # (TAPS, PH)
    valid = (ky >= 0) & (ky < K_SIZE)
    kyc = jnp.clip(ky, 0, K_SIZE - 1)
    wg = w[:, :, kyc][:, :, :, :, kyc]                 # (ci, co, ty, ry, tx, rx)
    mask = (valid[:, :, None, None] & valid[None, None, :, :]).astype(w.dtype)
    wg = wg * mask[None, None]
    w_t = jnp.transpose(wg, (3, 5, 1, 2, 4, 0))        # (ry, rx, co, ty, tx, ci)
    return w_t.reshape(PH * PH * Cout, TAPS * TAPS * Cin)


def _deconv_phase_patches_cm(x_cnhw):
    """x (C, N, H, W) -> (9*C, N*H*W); rows (ty, tx, ci), cols (n, y, x)."""
    C, N, H, W = x_cnhw.shape
    xp = jnp.pad(x_cnhw, ((0, 0), (0, 0), (DK_PAD, DK_PAD), (DK_PAD, DK_PAD)))
    taps = []
    for ty in range(TAPS):
        for tx in range(TAPS):
            taps.append(xp[:, :, ty:ty + H, tx:tx + W])
    p = jnp.stack(taps, axis=0)                        # (9, C, N, H, W)
    return p.reshape(TAPS * TAPS * C, N * H * W)


def _conv_patches_s4_cm(x_cnhw):
    """Stride-4, k=8, p=2 conv patches: x (C, N, H, W) -> (64*C, N*OH*OW);
    rows (kh, kw, ci), cols (n, oy, ox)."""
    C, N, H, W = x_cnhw.shape
    OH = (H + 2 * PAD - K_SIZE) // STRIDE + 1
    OW = (W + 2 * PAD - K_SIZE) // STRIDE + 1
    xp = jnp.pad(x_cnhw, ((0, 0), (0, 0), (PAD, PAD), (PAD, PAD)))
    taps = []
    for kh in range(K_SIZE):
        for kw in range(K_SIZE):
            taps.append(xp[:, :, kh:kh + STRIDE * OH:STRIDE,
                           kw:kw + STRIDE * OW:STRIDE])
    p = jnp.stack(taps, axis=0)                        # (64, C, N, OH, OW)
    return p.reshape(K_SIZE * K_SIZE * C, N * OH * OW)


def _phase_to_spatial_cm(out_t, N, C, H, W):
    """(16*C, N*H*W) phase format (rows (ry, rx, c), cols (n, y, x)) -> (C, N, 4H, 4W)."""
    o = out_t.reshape(PH, PH, C, N, H, W)
    o = jnp.transpose(o, (2, 3, 4, 0, 5, 1))           # (C, N, H, ry, W, rx)
    return o.reshape(C, N, PH * H, PH * W)


def _phase_to_spatial_nchw(out_t, N, C, H, W):
    """(16*C, N*H*W) phase format -> (N, C, 4H, 4W)."""
    o = out_t.reshape(PH, PH, C, N, H, W)
    o = jnp.transpose(o, (3, 2, 4, 0, 5, 1))           # (N, C, H, ry, W, rx)
    return o.reshape(N, C, PH * H, PH * W)


def init_up_block_params(key, num_filter, k=K_SIZE):
    C = num_filter
    bound = 1.0 / jnp.sqrt(jnp.float32(C * k * k))
    keys = jax.random.split(key, 6)

    def u(kk, shape):
        return jax.random.uniform(kk, shape, jnp.float32, -bound, bound)

    return dict(
        w1=u(keys[0], (C, C, k, k)),        # ConvTranspose2d weight (Cin, Cout, KH, KW)
        b1=u(keys[1], (C,)),
        a1=jnp.array([0.25], jnp.float32),  # nn.PReLU() default
        w2=u(keys[2], (C, C, k, k)),        # Conv2d weight (Cout, Cin, KH, KW)
        b2=u(keys[3], (C,)),
        a2=jnp.array([0.25], jnp.float32),
        w3=u(keys[4], (C, C, k, k)),        # ConvTranspose2d weight
        b3=u(keys[5], (C,)),
        a3=jnp.array([0.25], jnp.float32),
    )


def up_block_forward(x_nchw, params, tile_n=512):
    N, C, H, W = x_nchw.shape
    M = N * H * W
    x_cm = jnp.transpose(x_nchw, (1, 0, 2, 3))                       # (C, N, H, W)

    # --- up_conv1: ConvTranspose2d(k=8,s=4,p=2) + PReLU -> h0 (phase format) ---
    w1_t = _deconv_phase_weight_t(params['w1'])                      # (16C, 9C)
    b1_ph = jnp.tile(params['b1'].reshape(1, C), (PH * PH, 1)).reshape(PH * PH * C, 1)
    p1 = _deconv_phase_patches_cm(x_cm)                              # (9C, M)
    h0_ph = _fused_gemm(params['a1'], w1_t, b1_ph, p1, tile_n=tile_n)  # (16C, M) f32
    h0_cm = _phase_to_spatial_cm(h0_ph, N, C, H, W)                  # (C, N, 4H, 4W)

    # --- up_conv2: Conv2d(k=8,s=4,p=2) + PReLU, fused "- x" -> (l0 - x) ---
    w2_t = jnp.transpose(params['w2'], (0, 2, 3, 1)).reshape(C, K_SIZE * K_SIZE * C)
    p2 = _conv_patches_s4_cm(h0_cm)                                  # (64C, M)
    x_t = x_cm.reshape(C, M)
    lmx_t = _fused_gemm(params['a2'], w2_t, params['b2'].reshape(C, 1), p2,
                        extra=x_t, combine=-1.0, tile_n=tile_n)      # prelu(conv) - x

    # --- up_conv3: ConvTranspose2d(k=8,s=4,p=2) + PReLU, fused "+ h0" -> h1 + h0 ---
    lmx_cm = lmx_t.reshape(C, N, H, W)                               # (C, N, H, W)
    w3_t = _deconv_phase_weight_t(params['w3'])
    b3_ph = jnp.tile(params['b3'].reshape(1, C), (PH * PH, 1)).reshape(PH * PH * C, 1)
    p3 = _deconv_phase_patches_cm(lmx_cm)
    out_ph = _fused_gemm(params['a3'], w3_t, b3_ph, p3,
                         extra=h0_ph, combine=1.0, tile_n=tile_n)    # prelu(deconv) + h0
    return _phase_to_spatial_nchw(out_ph, N, C, H, W)                # (N, C, 4H, 4W)


# --------------------------- pure-JAX reference -------------------------------
def _prelu(x, a):
    return jnp.where(x >= 0, x, a * x)


def up_block_reference(x_nchw, params):
    x = jnp.transpose(x_nchw, (0, 2, 3, 1))                          # NHWC
    dn = ('NHWC', 'HWIO', 'NHWC')
    hp = lax.Precision.HIGHEST
    wt1 = jnp.transpose(params['w1'][:, :, ::-1, ::-1], (2, 3, 0, 1))
    w2 = jnp.transpose(params['w2'], (2, 3, 1, 0))
    wt3 = jnp.transpose(params['w3'][:, :, ::-1, ::-1], (2, 3, 0, 1))
    dp = K_SIZE - 1 - PAD
    h0 = _prelu(lax.conv_general_dilated(x, wt1, (1, 1), [(dp, dp)] * 2,
                                         lhs_dilation=(STRIDE, STRIDE),
                                         dimension_numbers=dn, precision=hp)
                + params['b1'], params['a1'][0])
    l0 = _prelu(lax.conv_general_dilated(h0, w2, (STRIDE, STRIDE), [(PAD, PAD)] * 2,
                                         dimension_numbers=dn, precision=hp)
                + params['b2'], params['a2'][0])
    h1 = _prelu(lax.conv_general_dilated(l0 - x, wt3, (1, 1), [(dp, dp)] * 2,
                                         lhs_dilation=(STRIDE, STRIDE),
                                         dimension_numbers=dn, precision=hp)
                + params['b3'], params['a3'][0])
    return jnp.transpose(h1 + h0, (0, 3, 1, 2))                      # NCHW


if __name__ == "__main__":
    key = jax.random.PRNGKey(0)
    kp, kx = jax.random.split(key)
    N, C, H, W = 2, 4, 16, 16
    params = init_up_block_params(kp, C)
    x = jax.random.normal(kx, (N, C, H, W), jnp.float32)

    out = jax.jit(up_block_forward)(x, params)
    out = jax.block_until_ready(out)

    assert out.shape == (N, C, H * STRIDE, W * STRIDE), out.shape
    ref = up_block_reference(x, params)
    max_err = float(jnp.max(jnp.abs(out - ref)))
    if not jnp.allclose(out, ref, rtol=2e-2, atol=2e-2):
        raise AssertionError(f"Pallas UpBlock mismatch, max abs err={max_err}")
    print("KERNEL_OK")
</pallas_src>

<mosaic_0001>
module attributes {stable_mosaic.version = 11 : i64} {
  func.func @_gemm_bias_prelu_kernel(%arg0: i32, %arg1: memref<1xf32, #tpu.memory_space<smem>>, %arg2: memref<64x48xbf16, #tpu.memory_space<vmem>>, %arg3: memref<64x1xf32, #tpu.memory_space<vmem>>, %arg4: memref<48x512xbf16, #tpu.memory_space<vmem>>, %arg5: memref<64x512xf32, #tpu.memory_space<vmem>>) attributes {dimension_semantics = [#tpu.dimension_semantics<parallel>], iteration_bounds = array<i64: 1>, scalar_prefetch = 0 : i64, scratch_operands = 0 : i64, tpu.core_type = #tpu.core_type<tc>, window_params = [{transform_indices = @transform_0, window_bounds = array<i64: 1>}, {pipeline_mode = #tpu.pipeline_mode<synchronous>, transform_indices = @transform_1, window_bounds = array<i64: 64, 48>}, {pipeline_mode = #tpu.pipeline_mode<synchronous>, transform_indices = @transform_2, window_bounds = array<i64: 64, 1>}, {transform_indices = @transform_3, window_bounds = array<i64: 48, 512>}, {transform_indices = @transform_4, window_bounds = array<i64: 64, 512>}]} {
    %c0 = arith.constant 0 : index
    %c0_0 = arith.constant 0 : index
    %0 = vector.load %arg2[%c0, %c0_0] : memref<64x48xbf16, #tpu.memory_space<vmem>>, vector<64x48xbf16>
    %c0_1 = arith.constant 0 : index
    %c0_2 = arith.constant 0 : index
    %1 = vector.load %arg4[%c0_1, %c0_2] : memref<48x512xbf16, #tpu.memory_space<vmem>>, vector<48x512xbf16>
    %cst = arith.constant dense<0.000000e+00> : vector<64x512xf32>
    %2 = tpu.matmul %0, %1, %cst {dimension_numbers = #tpu.dot_dimension_numbers<[1], [0], [0], [1], [0, 0, 1, 1], [], []>} : vector<64x48xbf16>, vector<48x512xbf16>, vector<64x512xf32> -> vector<64x512xf32>
    %c0_3 = arith.constant 0 : index
    %c0_4 = arith.constant 0 : index
    %3 = vector.load %arg3[%c0_3, %c0_4] : memref<64x1xf32, #tpu.memory_space<vmem>>, vector<64x1xf32>
    %4 = vector.broadcast %3 : vector<64x1xf32> to vector<64x512xf32>
    %5 = arith.addf %2, %4 : vector<64x512xf32>
    %c0_5 = arith.constant 0 : index
    %6 = memref.load %arg1[%c0_5] : memref<1xf32, #tpu.memory_space<smem>>
    %cst_6 = arith.constant 0.000000e+00 : f32
    %7 = vector.broadcast %cst_6 : f32 to vector<64x512xf32>
    %8 = arith.cmpf oge, %5, %7 : vector<64x512xf32>
    %9 = vector.broadcast %6 : f32 to vector<64x512xf32>
    %10 = arith.mulf %9, %5 : vector<64x512xf32>
    %11 = arith.select %8, %5, %10 : vector<64x512xi1>, vector<64x512xf32>
    %c0_7 = arith.constant 0 : index
    %c0_8 = arith.constant 0 : index
    %12 = vector.load %arg5[%c0_7, %c0_8] : memref<64x512xf32, #tpu.memory_space<vmem>>, vector<64x512xf32>
    tpu.vector_store %arg5[%c0_7, %c0_8], %11 {strides = array<i32>} : memref<64x512xf32, #tpu.memory_space<vmem>>, vector<64x512xf32>,
    return
  }
  func.func @transform_0(%arg0: i32) -> i32 {
    %c0_i32 = arith.constant 0 : i32
    %c0_i32_0 = arith.constant 0 : i32
    return %c0_i32 : i32
  }
  func.func @transform_1(%arg0: i32) -> (i32, i32) {
    %c0_i32 = arith.constant 0 : i32
    %c0_i32_0 = arith.constant 0 : i32
    %c0_i32_1 = arith.constant 0 : i32
    return %c0_i32, %c0_i32_0 : i32, i32
  }
  func.func @transform_2(%arg0: i32) -> (i32, i32) {
    %c0_i32 = arith.constant 0 : i32
    %c0_i32_0 = arith.constant 0 : i32
    %c0_i32_1 = arith.constant 0 : i32
    return %c0_i32, %c0_i32_0 : i32, i32
  }
  func.func @transform_3(%arg0: i32) -> (i32, i32) {
    %c0_i32 = arith.constant 0 : i32
    %c0_i32_0 = arith.constant 0 : i32
    return %c0_i32, %arg0 : i32, i32
  }
  func.func @transform_4(%arg0: i32) -> (i32, i32) {
    %c0_i32 = arith.constant 0 : i32
    %c0_i32_0 = arith.constant 0 : i32
    return %c0_i32, %arg0 : i32, i32
  }
}

module attributes {stable_mosaic.version = 11 : i64} {
  func.func @_gemm_bias_prelu_res_kernel(%arg0: i32, %arg1: memref<1xf32, #tpu.memory_space<smem>>, %arg2: memref<16x256xbf16, #tpu.memory_space<vmem>>, %arg3: memref<16x1xf32, #tpu.memory_space<vmem>>, %arg4: memref<256x512xbf16, #tpu.memory_space<vmem>>, %arg5: memref<16x512xf32, #tpu.memory_space<vmem>>, %arg6: memref<16x512xf32, #tpu.memory_space<vmem>>) attributes {dimension_semantics = [#tpu.dimension_semantics<parallel>], iteration_bounds = array<i64: 1>, scalar_prefetch = 0 : i64, scratch_operands = 0 : i64, tpu.core_type = #tpu.core_type<tc>, window_params = [{transform_indices = @transform_0, window_bounds = array<i64: 1>}, {pipeline_mode = #tpu.pipeline_mode<synchronous>, transform_indices = @transform_1, window_bounds = array<i64: 16, 256>}, {pipeline_mode = #tpu.pipeline_mode<synchronous>, transform_indices = @transform_2, window_bounds = array<i64: 16, 1>}, {transform_indices = @transform_3, window_bounds = array<i64: 256, 512>}, {transform_indices = @transform_4, window_bounds = array<i64: 16, 512>}, {transform_indices = @transform_5, window_bounds = array<i64: 16, 512>}]} {
    %c0 = arith.constant 0 : index
    %c0_0 = arith.constant 0 : index
    %0 = vector.load %arg2[%c0, %c0_0] : memref<16x256xbf16, #tpu.memory_space<vmem>>, vector<16x256xbf16>
    %c0_1 = arith.constant 0 : index
    %c0_2 = arith.constant 0 : index
    %1 = vector.load %arg4[%c0_1, %c0_2] : memref<256x512xbf16, #tpu.memory_space<vmem>>, vector<256x512xbf16>
    %cst = arith.constant dense<0.000000e+00> : vector<16x512xf32>
    %2 = tpu.matmul %0, %1, %cst {dimension_numbers = #tpu.dot_dimension_numbers<[1], [0], [0], [1], [0, 0, 1, 1], [], []>} : vector<16x256xbf16>, vector<256x512xbf16>, vector<16x512xf32> -> vector<16x512xf32>
    %c0_3 = arith.constant 0 : index
    %c0_4 = arith.constant 0 : index
    %3 = vector.load %arg3[%c0_3, %c0_4] : memref<16x1xf32, #tpu.memory_space<vmem>>, vector<16x1xf32>
    %4 = vector.broadcast %3 : vector<16x1xf32> to vector<16x512xf32>
    %5 = arith.addf %2, %4 : vector<16x512xf32>
    %c0_5 = arith.constant 0 : index
    %6 = memref.load %arg1[%c0_5] : memref<1xf32, #tpu.memory_space<smem>>
    %cst_6 = arith.constant 0.000000e+00 : f32
    %7 = vector.broadcast %cst_6 : f32 to vector<16x512xf32>
    %8 = arith.cmpf oge, %5, %7 : vector<16x512xf32>
    %9 = vector.broadcast %6 : f32 to vector<16x512xf32>
    %10 = arith.mulf %9, %5 : vector<16x512xf32>
    %11 = arith.select %8, %5, %10 : vector<16x512xi1>, vector<16x512xf32>
    %c0_7 = arith.constant 0 : index
    %c0_8 = arith.constant 0 : index
    %12 = vector.load %arg5[%c0_7, %c0_8] : memref<16x512xf32, #tpu.memory_space<vmem>>, vector<16x512xf32>
    %cst_9 = arith.constant -1.000000e+00 : f32
    %13 = vector.broadcast %cst_9 : f32 to vector<16x512xf32>
    %14 = arith.mulf %13, %12 : vector<16x512xf32>
    %15 = arith.addf %11, %14 : vector<16x512xf32>
    %c0_10 = arith.constant 0 : index
    %c0_11 = arith.constant 0 : index
    %16 = vector.load %arg6[%c0_10, %c0_11] : memref<16x512xf32, #tpu.memory_space<vmem>>, vector<16x512xf32>
    tpu.vector_store %arg6[%c0_10, %c0_11], %15 {strides = array<i32>} : memref<16x512xf32, #tpu.memory_space<vmem>>, vector<16x512xf32>,
    return
  }
  func.func @transform_0(%arg0: i32) -> i32 {
    %c0_i32 = arith.constant 0 : i32
    %c0_i32_0 = arith.constant 0 : i32
    return %c0_i32 : i32
  }
  func.func @transform_1(%arg0: i32) -> (i32, i32) {
    %c0_i32 = arith.constant 0 : i32
    %c0_i32_0 = arith.constant 0 : i32
    %c0_i32_1 = arith.constant 0 : i32
    return %c0_i32, %c0_i32_0 : i32, i32
  }
  func.func @transform_2(%arg0: i32) -> (i32, i32) {
    %c0_i32 = arith.constant 0 : i32
    %c0_i32_0 = arith.constant 0 : i32
    %c0_i32_1 = arith.constant 0 : i32
    return %c0_i32, %c0_i32_0 : i32, i32
  }
  func.func @transform_3(%arg0: i32) -> (i32, i32) {
    %c0_i32 = arith.constant 0 : i32
    %c0_i32_0 = arith.constant 0 : i32
    return %c0_i32, %arg0 : i32, i32
  }
  func.func @transform_4(%arg0: i32) -> (i32, i32) {
    %c0_i32 = arith.constant 0 : i32
    %c0_i32_0 = arith.constant 0 : i32
    return %c0_i32, %arg0 : i32, i32
  }
  func.func @transform_5(%arg0: i32) -> (i32, i32) {
    %c0_i32 = arith.constant 0 : i32
    %c0_i32_0 = arith.constant 0 : i32
    return %c0_i32, %arg0 : i32, i32
  }
}

module attributes {stable_mosaic.version = 11 : i64} {
  func.func @_gemm_bias_prelu_res_kernel(%arg0: i32, %arg1: memref<1xf32, #tpu.memory_space<smem>>, %arg2: memref<64x48xbf16, #tpu.memory_space<vmem>>, %arg3: memref<64x1xf32, #tpu.memory_space<vmem>>, %arg4: memref<48x512xbf16, #tpu.memory_space<vmem>>, %arg5: memref<64x512xf32, #tpu.memory_space<vmem>>, %arg6: memref<64x512xf32, #tpu.memory_space<vmem>>) attributes {dimension_semantics = [#tpu.dimension_semantics<parallel>], iteration_bounds = array<i64: 1>, scalar_prefetch = 0 : i64, scratch_operands = 0 : i64, tpu.core_type = #tpu.core_type<tc>, window_params = [{transform_indices = @transform_0, window_bounds = array<i64: 1>}, {pipeline_mode = #tpu.pipeline_mode<synchronous>, transform_indices = @transform_1, window_bounds = array<i64: 64, 48>}, {pipeline_mode = #tpu.pipeline_mode<synchronous>, transform_indices = @transform_2, window_bounds = array<i64: 64, 1>}, {transform_indices = @transform_3, window_bounds = array<i64: 48, 512>}, {transform_indices = @transform_4, window_bounds = array<i64: 64, 512>}, {transform_indices = @transform_5, window_bounds = array<i64: 64, 512>}]} {
    %c0 = arith.constant 0 : index
    %c0_0 = arith.constant 0 : index
    %0 = vector.load %arg2[%c0, %c0_0] : memref<64x48xbf16, #tpu.memory_space<vmem>>, vector<64x48xbf16>
    %c0_1 = arith.constant 0 : index
    %c0_2 = arith.constant 0 : index
    %1 = vector.load %arg4[%c0_1, %c0_2] : memref<48x512xbf16, #tpu.memory_space<vmem>>, vector<48x512xbf16>
    %cst = arith.constant dense<0.000000e+00> : vector<64x512xf32>
    %2 = tpu.matmul %0, %1, %cst {dimension_numbers = #tpu.dot_dimension_numbers<[1], [0], [0], [1], [0, 0, 1, 1], [], []>} : vector<64x48xbf16>, vector<48x512xbf16>, vector<64x512xf32> -> vector<64x512xf32>
    %c0_3 = arith.constant 0 : index
    %c0_4 = arith.constant 0 : index
    %3 = vector.load %arg3[%c0_3, %c0_4] : memref<64x1xf32, #tpu.memory_space<vmem>>, vector<64x1xf32>
    %4 = vector.broadcast %3 : vector<64x1xf32> to vector<64x512xf32>
    %5 = arith.addf %2, %4 : vector<64x512xf32>
    %c0_5 = arith.constant 0 : index
    %6 = memref.load %arg1[%c0_5] : memref<1xf32, #tpu.memory_space<smem>>
    %cst_6 = arith.constant 0.000000e+00 : f32
    %7 = vector.broadcast %cst_6 : f32 to vector<64x512xf32>
    %8 = arith.cmpf oge, %5, %7 : vector<64x512xf32>
    %9 = vector.broadcast %6 : f32 to vector<64x512xf32>
    %10 = arith.mulf %9, %5 : vector<64x512xf32>
    %11 = arith.select %8, %5, %10 : vector<64x512xi1>, vector<64x512xf32>
    %c0_7 = arith.constant 0 : index
    %c0_8 = arith.constant 0 : index
    %12 = vector.load %arg5[%c0_7, %c0_8] : memref<64x512xf32, #tpu.memory_space<vmem>>, vector<64x512xf32>
    %cst_9 = arith.constant 1.000000e+00 : f32
    %13 = vector.broadcast %cst_9 : f32 to vector<64x512xf32>
    %14 = arith.mulf %13, %12 : vector<64x512xf32>
    %15 = arith.addf %11, %14 : vector<64x512xf32>
    %c0_10 = arith.constant 0 : index
    %c0_11 = arith.constant 0 : index
    %16 = vector.load %arg6[%c0_10, %c0_11] : memref<64x512xf32, #tpu.memory_space<vmem>>, vector<64x512xf32>
    tpu.vector_store %arg6[%c0_10, %c0_11], %15 {strides = array<i32>} : memref<64x512xf32, #tpu.memory_space<vmem>>, vector<64x512xf32>,
    return
  }
  func.func @transform_0(%arg0: i32) -> i32 {
    %c0_i32 = arith.constant 0 : i32
    %c0_i32_0 = arith.constant 0 : i32
    return %c0_i32 : i32
  }
  func.func @transform_1(%arg0: i32) -> (i32, i32) {
    %c0_i32 = arith.constant 0 : i32
    %c0_i32_0 = arith.constant 0 : i32
    %c0_i32_1 = arith.constant 0 : i32
    return %c0_i32, %c0_i32_0 : i32, i32
  }
  func.func @transform_2(%arg0: i32) -> (i32, i32) {
    %c0_i32 = arith.constant 0 : i32
    %c0_i32_0 = arith.constant 0 : i32
    %c0_i32_1 = arith.constant 0 : i32
    return %c0_i32, %c0_i32_0 : i32, i32
  }
  func.func @transform_3(%arg0: i32) -> (i32, i32) {
    %c0_i32 = arith.constant 0 : i32
    %c0_i32_0 = arith.constant 0 : i32
    return %c0_i32, %arg0 : i32, i32
  }
  func.func @transform_4(%arg0: i32) -> (i32, i32) {
    %c0_i32 = arith.constant 0 : i32
    %c0_i32_0 = arith.constant 0 : i32
    return %c0_i32, %arg0 : i32, i32
  }
  func.func @transform_5(%arg0: i32) -> (i32, i32) {
    %c0_i32 = arith.constant 0 : i32
    %c0_i32_0 = arith.constant 0 : i32
    return %c0_i32, %arg0 : i32, i32
  }
}

</mosaic_0001>

<bundles_post_ra>
// kernel: tile.10
= control target key start
LH: loop header
LB: loop body
LE: loop exit
PB: predicated region body
PF: predicated region fallthrough
CT: control target
= control target key end

     0   :  { %s28_s0 = inlined_call_operand.vmem [shape: f32[4], index: 0, kind: input, shape index: {}]   ;;  %s29_s1 = inlined_call_operand.vmem [shape: f32[16,1,1,4], index: 1, kind: output, shape index: {}]  }
   0x1   :  { %v4_v0 = vld [vmem:[%s28_s0] ss:$0 sm:$0xff] }
   0x2   :  { %5 = vst [vmem:[%s29_s1] sm:$0xff] %v4_v0  ;;  %8 = vst [vmem:[%s29_s1 + $0x8] sm:$0xff] %v4_v0 }

// kernel: tile.1
= control target key start
LH: loop header
LB: loop body
LE: loop exit
PB: predicated region body
PF: predicated region fallthrough
CT: control target
= control target key end

     0   :  { %vm3_vm0 = vcmask 7168   ;;  %s64_s10 = smov 127   ;;  %s65_s15 = smov 125   ;;  %s114_s0 = inlined_call_operand.vmem [shape: f32[16,1,1,4], index: 0, kind: input, shape index: {}]   ;;  %s115_s1 = inlined_call_operand.vmem [shape: f32[64,1], index: 1, kind: output, shape index: {}]  }
   0x1   :  { %v23_v0 = vld [vmem:[%s114_s0] sm:$0xff]   ;;  %v49_v1 = vld [vmem:[%s114_s0 + $0x8] sm:$0xff]   ;;  %s63_s0 = smov 126  }
   0x2   :  { %24 = vrot.lane.b32.xlu1 %v23_v0, %s63_s0  ;;  %11 = vrot.lane.b32.xlu0 %v23_v0, %s64_s10  ;;  %4 = vst.msk [vmem:[%s115_s1] ss:$4 sm:$0xff] %vm3_vm0, %v23_v0   ;;  %50 = vst.msk [vmem:[%s115_s1 + $0x20] ss:$4 sm:$0xff] %vm3_vm0, %v49_v1  }
   0x6   :  { %31 = vrot.lane.b32.xlu1 %v49_v1, %s63_s0  ;;  %18 = vrot.lane.b32.xlu0 %v49_v1, %s64_s10 }
   0xa   :  { %44 = vrot.lane.b32.xlu1 %v49_v1, %s65_s15  ;;  %37 = vrot.lane.b32.xlu0 %v23_v0, %s65_s15 }
  0x74   :  { %v25_v2 = vpop.permute.xlu1 %24   ;;  %v12_v3 = vpop.permute.xlu0 %11  }
  0x75   :  { %54 = vst.msk [vmem:[%s115_s1 + $0x2] ss:$4 sm:$0xff] %vm3_vm0, %v25_v2   ;;  %51 = vst.msk [vmem:[%s115_s1 + $0x1] ss:$4 sm:$0xff] %vm3_vm0, %v12_v3  }
  0x78   :  { %v32_v4 = vpop.permute.xlu1 %31   ;;  %v19_v5 = vpop.permute.xlu0 %18  }
  0x79   :  { %56 = vst.msk [vmem:[%s115_s1 + $0x22] ss:$4 sm:$0xff] %vm3_vm0, %v32_v4   ;;  %53 = vst.msk [vmem:[%s115_s1 + $0x21] ss:$4 sm:$0xff] %vm3_vm0, %v19_v5  }
  0x7c   :  { %v45_v6 = vpop.permute.xlu1 %44   ;;  %v38_v7 = vpop.permute.xlu0 %37  }
  0x7d   :  { %59 = vst.msk [vmem:[%s115_s1 + $0x23] ss:$4 sm:$0xff] %vm3_vm0, %v45_v6   ;;  %57 = vst.msk [vmem:[%s115_s1 + $0x3] ss:$4 sm:$0xff] %vm3_vm0, %v38_v7  }

// kernel: up_block_forward.3
= control target key start
LH: loop header
LB: loop body
LE: loop exit
PB: predicated region body
PF: predicated region fallthrough
CT: control target
= control target key end

     0   :  { %v509_v1 = vmov 0   ;;  %vm167_vm0 = vcmask 392192   ;;  %s748_s3 = inlined_call_operand.vmem [shape: bf16[48,512], index: 3, kind: input, shape index: {}]   ;;  %s749_s1 = inlined_call_operand.vmem [shape: bf16[64,48], index: 1, kind: input, shape index: {}]   ;;  %s750_s2 = inlined_call_operand.vmem [shape: f32[64,1], index: 2, kind: input, shape index: {}]   ;;  %s751_s0 = inlined_call_operand.<no memory space> [shape: f32[1], index: 0, kind: input, shape index: {}]   ;;  %s752_s4 = inlined_call_operand.vmem [shape: f32[64,512], index: 4, kind: output, shape index: {}]  }
   0x1   :  { %v487_v0 = vld [vmem:[%s748_s3 + $0x4] ss:$16 sps:$4 sm:$0xff]   ;;  %212 = vmatprep.mubr.bf16.mxu0 %v509_v1  ;;  %285 = vmatprep.mubr.bf16.mxu1 %v509_v1  ;;  %v489_v2 = vld [vmem:[%s748_s3 + $0xc] ss:$16 sps:$4 sm:$0xff]   ;;  %v491_v3 = vld [vmem:[%s748_s3] ss:$16 sps:$4 sm:$0xff]   ;;  %v618_v28 = vstv %s751_s0 }
   0x2   :  { %485 = vset.pattern.permute.xlu0 %v509_v1  ;;  %486 = vset.pattern.permute.xlu1 %v509_v1  ;;  %v492_v4 = vld [vmem:[%s748_s3 + $0x8] ss:$16 sps:$4 sm:$0xff]   ;;  %v493_v5 = vld [vmem:[%s748_s3 + $0x24] ss:$16 sps:$4 sm:$0xff]   ;;  %v495_v6 = vld [vmem:[%s748_s3 + $0x2c] ss:$16 sps:$4 sm:$0xff]  }
   0x3   :  { %180 = vmatprep.subr.bf16.mxu0 %v487_v0  ;;  %253 = vmatprep.subr.bf16.mxu1 %v489_v2  ;;  %v497_v7 = vld [vmem:[%s748_s3 + $0x20] ss:$16 sps:$4 sm:$0xff]   ;;  %v498_v8 = vld [vmem:[%s748_s3 + $0x28] ss:$16 sps:$4 sm:$0xff]   ;;  %v499_v9 = vld [vmem:[%s748_s3 + $0x44] ss:$16 sps:$4 sm:$0xff]  }
   0x4   :  { %181 = vmatpush1.bf16.msra.mxu0 %v491_v3  ;;  %254 = vmatpush1.bf16.msra.mxu1 %v492_v4  ;;  %v501_v10 = vld [vmem:[%s748_s3 + $0x4c] ss:$16 sps:$4 sm:$0xff]   ;;  %v503_v11 = vld [vmem:[%s748_s3 + $0x40] ss:$16 sps:$4 sm:$0xff]   ;;  %v504_v12 = vld [vmem:[%s748_s3 + $0x48] ss:$16 sps:$4 sm:$0xff]  }
   0x5   :  { %182 = vmatprep.subr.bf16.mxu0 %v493_v5  ;;  %255 = vmatprep.subr.bf16.mxu1 %v495_v6  ;;  %v505_v13 = vld [vmem:[%s749_s1] sm:$0xff]   ;;  %v41_v15 = vld [vmem:[%s750_s2 + $0x10] sm:$0xff]  ;;  %v40_v16 = vld [vmem:[%s750_s2 + $0x8] sm:$0xff] }
   0x6   :  { %v39_v14 = vld [vmem:[%s750_s2] sm:$0xff]  ;;  %59 = vperm.xlu1 %486, %v41_v15   ;;  %v42_v17 = vld [vmem:[%s750_s2 + $0x18] sm:$0xff]  ;;  %v44_v18 = vld [vmem:[%s750_s2 + $0x28] sm:$0xff] }
   0x7   :  { %49 = vperm.xlu0 %485, %v39_v14   ;;  %v43_v19 = vld [vmem:[%s750_s2 + $0x20] sm:$0xff]  ;;  %v506_v20 = vld [vmem:[%s749_s1 + $0x8] sm:$0xff]   ;;  %v46_v21 = vld [vmem:[%s750_s2 + $0x38] sm:$0xff] }
   0x8   :  { %183 = vmatpush1.bf16.msra.mxu0 %v497_v7  ;;  %256 = vmatpush1.bf16.msra.mxu1 %v498_v8  ;;  %v45_v22 = vld [vmem:[%s750_s2 + $0x30] sm:$0xff]  ;;  %v508_v24 = vld [vmem:[%s749_s1 + $0x18] sm:$0xff]  }
   0x9   :  { %184 = vmatprep.subr.bf16.mxu0 %v499_v9  ;;  %257 = vmatprep.subr.bf16.mxu1 %v501_v10  ;;  %v507_v23 = vld [vmem:[%s749_s1 + $0x10] sm:$0xff]  }
   0xa   :  { %64 = vperm.xlu1 %486, %v42_v17  }
   0xb   :  { %54 = vperm.xlu0 %485, %v40_v16  }
   0xc   :  { %185 = vmatpush1.bf16.msra.mxu0 %v503_v11  ;;  %258 = vmatpush1.bf16.msra.mxu1 %v504_v12 }
   0xe   :  { %74 = vperm.xlu1 %486, %v44_v18  }
   0xf   :  { %476 = vmatmul.mubr.msk.bf16.vlgmr.msra.gmra.mrb[0].mxu0 %vm167_vm0, %v505_v13  ;;  %480 = vmatmul.mubr.msk.bf16.vlgmr.msra.gmra.mrb[0].mxu1 %vm167_vm0, %v505_v13 }
  0x10   :  { %222 = vmatprep.mubr.bf16.mxu0 %v509_v1  ;;  %295 = vmatprep.mubr.bf16.mxu1 %v509_v1 }
  0x11   :  { %69 = vperm.xlu0 %485, %v43_v19  }
  0x12   :  { %84 = vperm.xlu1 %486, %v46_v21  }
  0x15   :  { %79 = vperm.xlu0 %485, %v45_v22  }
  0x17   :  { %477 = vmatmul.mubr.msk.bf16.gmra.mrb[4].mxu0 %vm167_vm0, %v506_v20  ;;  %481 = vmatmul.mubr.msk.bf16.gmra.mrb[4].mxu1 %vm167_vm0, %v506_v20 }
  0x18   :  { %232 = vmatprep.mubr.bf16.mxu0 %v509_v1  ;;  %305 = vmatprep.mubr.bf16.mxu1 %v509_v1 }
  0x1f   :  { %478 = vmatmul.mubr.msk.bf16.gmra.mrb[8].mxu0 %vm167_vm0, %v507_v23  ;;  %482 = vmatmul.mubr.msk.bf16.gmra.mrb[8].mxu1 %vm167_vm0, %v507_v23 }
  0x20   :  { %242 = vmatprep.mubr.bf16.mxu0 %v509_v1  ;;  %315 = vmatprep.mubr.bf16.mxu1 %v509_v1 }
  0x27   :  { %479 = vmatmul.mubr.msk.bf16.gmra.mrb[12].mxu0 %vm167_vm0, %v508_v24  ;;  %483 = vmatmul.mubr.msk.bf16.gmra.mrb[12].mxu1 %vm167_vm0, %v508_v24 }
  0x85   :  { %v60_v50 = vpop.permute.xlu1 %59 }
  0x86   :  { %v50_v25 = vpop.permute.xlu0 %49 }
  0x89   :  { %v65_v11 = vpop.permute.xlu1 %64 }
  0x8a   :  { %v55_v26 = vpop.permute.xlu0 %54 }
  0x90   :  { %v70_v24 = vpop.permute.xlu0 %69 }
  0xe2   :  { %v214_v27 = vpop.f32.mrb[0].mxu0  ;;  %v287_v29 = vpop.f32.mrb[0].mxu1 }
  0xe3   :  { %v215_v30 = vadd.f32 %v214_v27, %v50_v25  ;;  %v288_v31 = vadd.f32 %v287_v29, %v50_v25  ;;  %v216_v32 = vpop.f32.mrb[1].mxu0  ;;  %v289_v33 = vpop.f32.mrb[1].mxu1 }
  0xe4   :  { %v217_v34 = vadd.f32 %v216_v32, %v50_v25  ;;  %v290_v35 = vadd.f32 %v289_v33, %v50_v25  ;;  %v218_v36 = vpop.f32.mrb[2].mxu0  ;;  %v291_v37 = vpop.f32.mrb[2].mxu1 }
  0xe5   :  { %vm327_vm1 = vcmp.ge.f32.partialorder %v215_v30, 0.0  ;;  %v360_v38 = vmul.f32 %v618_v28, %v215_v30  ;;  %vm329_vm2 = vcmp.ge.f32.partialorder %v288_v31, 0.0  ;;  %v362_v39 = vmul.f32 %v618_v28, %v288_v31  ;;  %v220_v40 = vpop.f32.mrb[3].mxu0  ;;  %v293_v41 = vpop.f32.mrb[3].mxu1 }
  0xe6   :  { %vm328_vm3 = vcmp.ge.f32.partialorder %v217_v34, 0.0  ;;  %v361_v42 = vmul.f32 %v618_v28, %v217_v34  ;;  %vm330_vm4 = vcmp.ge.f32.partialorder %v290_v35, 0.0  ;;  %v363_v43 = vmul.f32 %v618_v28, %v290_v35 }
  0xe7   :  { %v392_v44 = vsel %vm327_vm1, %v215_v30, %v360_v38  ;;  %v394_v45 = vsel %vm329_vm2, %v288_v31, %v362_v39  ;;  %v219_v46 = vadd.f32 %v218_v36, %v55_v26  ;;  %v292_v47 = vadd.f32 %v291_v37, %v55_v26 }
  0xe8   :  { %424 = vst [vmem:[%s752_s4] sm:$0xff] %v392_v44  ;;  %426 = vst [vmem:[%s752_s4 + $0x10] sm:$0xff] %v394_v45  ;;  %v393_v48 = vsel %vm328_vm3, %v217_v34, %v361_v42  ;;  %v395_v49 = vsel %vm330_vm4, %v290_v35, %v363_v43  ;;  %v221_v51 = vadd.f32 %v220_v40, %v55_v26 }
  0xe9   :  { %v294_v52 = vadd.f32 %v293_v41, %v55_v26  ;;  %425 = vst [vmem:[%s752_s4 + $0x8] sm:$0xff] %v393_v48  ;;  %427 = vst [vmem:[%s752_s4 + $0x18] sm:$0xff] %v395_v49  ;;  %vm331_vm5 = vcmp.ge.f32.partialorder %v219_v46, 0.0  ;;  %v364_v53 = vmul.f32 %v618_v28, %v219_v46  ;;  %vm333_vm6 = vcmp.ge.f32.partialorder %v292_v47, 0.0 }
  0xea   :  { %v366_v54 = vmul.f32 %v618_v28, %v292_v47  ;;  %vm332_vm7 = vcmp.ge.f32.partialorder %v221_v51, 0.0  ;;  %v365_v55 = vmul.f32 %v618_v28, %v221_v51  ;;  %v224_v57 = vpop.f32.mrb[4].mxu0  ;;  %v297_v58 = vpop.f32.mrb[4].mxu1 }
  0xeb   :  { %vm334_vm8 = vcmp.ge.f32.partialorder %v294_v52, 0.0  ;;  %v367_v56 = vmul.f32 %v618_v28, %v294_v52  ;;  %v396_v59 = vsel %vm331_vm5, %v219_v46, %v364_v53  ;;  %v225_v61 = vadd.f32 %v224_v57, %v60_v50  ;;  %v226_v63 = vpop.f32.mrb[5].mxu0  ;;  %v299_v0 = vpop.f32.mrb[5].mxu1 }
  0xec   :  { %v398_v60 = vsel %vm333_vm6, %v292_v47, %v366_v54  ;;  %v298_v62 = vadd.f32 %v297_v58, %v60_v50  ;;  %428 = vst [vmem:[%s752_s4 + $0x20] sm:$0xff] %v396_v59  ;;  %v397_v1 = vsel %vm332_vm7, %v221_v51, %v365_v55  ;;  %v227_v3 = vadd.f32 %v226_v63, %v60_v50  ;;  %v228_v5 = vpop.f32.mrb[6].mxu0  ;;  %v301_v6 = vpop.f32.mrb[6].mxu1 }
  0xed   :  { %430 = vst [vmem:[%s752_s4 + $0x30] sm:$0xff] %v398_v60  ;;  %v399_v2 = vsel %vm334_vm8, %v294_v52, %v367_v56  ;;  %v300_v4 = vadd.f32 %v299_v0, %v60_v50  ;;  %429 = vst [vmem:[%s752_s4 + $0x28] sm:$0xff] %v397_v1  ;;  %vm335_vm9 = vcmp.ge.f32.partialorder %v225_v61, 0.0  ;;  %v368_v7 = vmul.f32 %v618_v28, %v225_v61  ;;  %v230_v9 = vpop.f32.mrb[7].mxu0  ;;  %v303_v10 = vpop.f32.mrb[7].mxu1 }
  0xee   :  { %431 = vst [vmem:[%s752_s4 + $0x38] sm:$0xff] %v399_v2  ;;  %vm337_vm10 = vcmp.ge.f32.partialorder %v298_v62, 0.0  ;;  %v370_v8 = vmul.f32 %v618_v28, %v298_v62  ;;  %vm336_vm11 = vcmp.ge.f32.partialorder %v227_v3, 0.0  ;;  %v369_v12 = vmul.f32 %v618_v28, %v227_v3  ;;  %v75_v46 = vpop.permute.xlu1 %74  ;;  %v80_v57 = vpop.permute.xlu0 %79 }
  0xef   :  { %vm338_vm12 = vcmp.ge.f32.partialorder %v300_v4, 0.0  ;;  %v371_v13 = vmul.f32 %v618_v28, %v300_v4  ;;  %v400_v14 = vsel %vm335_vm9, %v225_v61, %v368_v7  ;;  %v229_v16 = vadd.f32 %v228_v5, %v65_v11 }
  0xf0   :  { %v402_v15 = vsel %vm337_vm10, %v298_v62, %v370_v8  ;;  %v302_v17 = vadd.f32 %v301_v6, %v65_v11  ;;  %432 = vst [vmem:[%s752_s4 + $0x40] sm:$0xff] %v400_v14  ;;  %v401_v18 = vsel %vm336_vm11, %v227_v3, %v369_v12  ;;  %v231_v20 = vadd.f32 %v230_v9, %v65_v11 }
  0xf1   :  { %434 = vst [vmem:[%s752_s4 + $0x50] sm:$0xff] %v402_v15  ;;  %v403_v19 = vsel %vm338_vm12, %v300_v4, %v371_v13  ;;  %v304_v21 = vadd.f32 %v303_v10, %v65_v11  ;;  %433 = vst [vmem:[%s752_s4 + $0x48] sm:$0xff] %v401_v18  ;;  %vm339_vm13 = vcmp.ge.f32.partialorder %v229_v16, 0.0  ;;  %v372_v22 = vmul.f32 %v618_v28, %v229_v16 }
  0xf2   :  { %435 = vst [vmem:[%s752_s4 + $0x58] sm:$0xff] %v403_v19  ;;  %vm341_vm14 = vcmp.ge.f32.partialorder %v302_v17, 0.0  ;;  %v374_v23 = vmul.f32 %v618_v28, %v302_v17  ;;  %vm340_vm15 = vcmp.ge.f32.partialorder %v231_v20, 0.0  ;;  %v373_v25 = vmul.f32 %v618_v28, %v231_v20  ;;  %v234_v27 = vpop.f32.mrb[8].mxu0  ;;  %v307_v29 = vpop.f32.mrb[8].mxu1 }
  0xf3   :  { %vm342_vm0 = vcmp.ge.f32.partialorder %v304_v21, 0.0  ;;  %v375_v26 = vmul.f32 %v618_v28, %v304_v21  ;;  %v404_v30 = vsel %vm339_vm13, %v229_v16, %v372_v22  ;;  %v235_v32 = vadd.f32 %v234_v27, %v70_v24  ;;  %v236_v34 = vpop.f32.mrb[9].mxu0  ;;  %v309_v35 = vpop.f32.mrb[9].mxu1 }
  0xf4   :  { %v406_v31 = vsel %vm341_vm14, %v302_v17, %v374_v23  ;;  %v308_v33 = vadd.f32 %v307_v29, %v70_v24  ;;  %436 = vst [vmem:[%s752_s4 + $0x60] sm:$0xff] %v404_v30  ;;  %v405_v36 = vsel %vm340_vm15, %v231_v20, %v373_v25  ;;  %v237_v38 = vadd.f32 %v236_v34, %v70_v24  ;;  %v238_v40 = vpop.f32.mrb[10].mxu0  ;;  %v311_v41 = vpop.f32.mrb[10].mxu1 }
  0xf5   :  { %438 = vst [vmem:[%s752_s4 + $0x70] sm:$0xff] %v406_v31  ;;  %v407_v37 = vsel %vm342_vm0, %v304_v21, %v375_v26  ;;  %v310_v39 = vadd.f32 %v309_v35, %v70_v24  ;;  %437 = vst [vmem:[%s752_s4 + $0x68] sm:$0xff] %v405_v36  ;;  %vm343_vm1 = vcmp.ge.f32.partialorder %v235_v32, 0.0  ;;  %v376_v42 = vmul.f32 %v618_v28, %v235_v32  ;;  %v240_v44 = vpop.f32.mrb[11].mxu0  ;;  %v313_v45 = vpop.f32.mrb[11].mxu1 }
  0xf6   :  { %439 = vst [vmem:[%s752_s4 + $0x78] sm:$0xff] %v407_v37  ;;  %vm345_vm2 = vcmp.ge.f32.partialorder %v308_v33, 0.0  ;;  %v378_v43 = vmul.f32 %v618_v28, %v308_v33  ;;  %vm344_vm3 = vcmp.ge.f32.partialorder %v237_v38, 0.0  ;;  %v377_v47 = vmul.f32 %v618_v28, %v237_v38  ;;  %v85_v16 = vpop.permute.xlu1 %84 }
  0xf7   :  { %vm346_vm4 = vcmp.ge.f32.partialorder %v310_v39, 0.0  ;;  %v379_v48 = vmul.f32 %v618_v28, %v310_v39  ;;  %v408_v49 = vsel %vm343_vm1, %v235_v32, %v376_v42  ;;  %v239_v51 = vadd.f32 %v238_v40, %v75_v46 }
  0xf8   :  { %v410_v50 = vsel %vm345_vm2, %v308_v33, %v378_v43  ;;  %v312_v52 = vadd.f32 %v311_v41, %v75_v46  ;;  %440 = vst [vmem:[%s752_s4 + $0x80] sm:$0xff] %v408_v49  ;;  %v409_v53 = vsel %vm344_vm3, %v237_v38, %v377_v47  ;;  %v241_v55 = vadd.f32 %v240_v44, %v75_v46 }
  0xf9   :  { %442 = vst [vmem:[%s752_s4 + $0x90] sm:$0xff] %v410_v50  ;;  %v411_v54 = vsel %vm346_vm4, %v310_v39, %v379_v48  ;;  %v314_v56 = vadd.f32 %v313_v45, %v75_v46  ;;  %441 = vst [vmem:[%s752_s4 + $0x88] sm:$0xff] %v409_v53  ;;  %vm347_vm5 = vcmp.ge.f32.partialorder %v239_v51, 0.0  ;;  %v380_v58 = vmul.f32 %v618_v28, %v239_v51 }
  0xfa   :  { %443 = vst [vmem:[%s752_s4 + $0x98] sm:$0xff] %v411_v54  ;;  %vm349_vm6 = vcmp.ge.f32.partialorder %v312_v52, 0.0  ;;  %v382_v59 = vmul.f32 %v618_v28, %v312_v52  ;;  %vm348_vm7 = vcmp.ge.f32.partialorder %v241_v55, 0.0  ;;  %v381_v60 = vmul.f32 %v618_v28, %v241_v55  ;;  %v244_v62 = vpop.f32.mrb[12].mxu0  ;;  %v317_v63 = vpop.f32.mrb[12].mxu1 }
  0xfb   :  { %vm350_vm8 = vcmp.ge.f32.partialorder %v314_v56, 0.0  ;;  %v383_v61 = vmul.f32 %v618_v28, %v314_v56  ;;  %v412_v0 = vsel %vm347_vm5, %v239_v51, %v380_v58  ;;  %v245_v2 = vadd.f32 %v244_v62, %v80_v57  ;;  %v246_v4 = vpop.f32.mrb[13].mxu0  ;;  %v319_v5 = vpop.f32.mrb[13].mxu1 }
  0xfc   :  { %v414_v1 = vsel %vm349_vm6, %v312_v52, %v382_v59  ;;  %v318_v3 = vadd.f32 %v317_v63, %v80_v57  ;;  %444 = vst [vmem:[%s752_s4 + $0xa0] sm:$0xff] %v412_v0  ;;  %v413_v6 = vsel %vm348_vm7, %v241_v55, %v381_v60  ;;  %v247_v8 = vadd.f32 %v246_v4, %v80_v57  ;;  %v248_v10 = vpop.f32.mrb[14].mxu0  ;;  %v321_v11 = vpop.f32.mrb[14].mxu1 }
  0xfd   :  { %446 = vst [vmem:[%s752_s4 + $0xb0] sm:$0xff] %v414_v1  ;;  %v415_v7 = vsel %vm350_vm8, %v314_v56, %v383_v61  ;;  %v320_v9 = vadd.f32 %v319_v5, %v80_v57  ;;  %445 = vst [vmem:[%s752_s4 + $0xa8] sm:$0xff] %v413_v6  ;;  %vm351_vm9 = vcmp.ge.f32.partialorder %v245_v2, 0.0  ;;  %v384_v12 = vmul.f32 %v618_v28, %v245_v2  ;;  %v250_v14 = vpop.f32.mrb[15].mxu0  ;;  %v323_v15 = vpop.f32.mrb[15].mxu1 }
  0xfe   :  { %447 = vst [vmem:[%s752_s4 + $0xb8] sm:$0xff] %v415_v7  ;;  %vm353_vm10 = vcmp.ge.f32.partialorder %v318_v3, 0.0  ;;  %v386_v13 = vmul.f32 %v618_v28, %v318_v3  ;;  %vm352_vm11 = vcmp.ge.f32.partialorder %v247_v8, 0.0  ;;  %v385_v17 = vmul.f32 %v618_v28, %v247_v8 }
  0xff   :  { %vm354_vm12 = vcmp.ge.f32.partialorder %v320_v9, 0.0  ;;  %v387_v18 = vmul.f32 %v618_v28, %v320_v9  ;;  %v416_v19 = vsel %vm351_vm9, %v245_v2, %v384_v12  ;;  %v249_v21 = vadd.f32 %v248_v10, %v85_v16 }
 0x100   :  { %v418_v20 = vsel %vm353_vm10, %v318_v3, %v386_v13  ;;  %v322_v22 = vadd.f32 %v321_v11, %v85_v16  ;;  %448 = vst [vmem:[%s752_s4 + $0xc0] sm:$0xff] %v416_v19  ;;  %v417_v23 = vsel %vm352_vm11, %v247_v8, %v385_v17  ;;  %v251_v25 = vadd.f32 %v250_v14, %v85_v16 }
 0x101   :  { %450 = vst [vmem:[%s752_s4 + $0xd0] sm:$0xff] %v418_v20  ;;  %v419_v24 = vsel %vm354_vm12, %v320_v9, %v387_v18  ;;  %v324_v26 = vadd.f32 %v323_v15, %v85_v16  ;;  %449 = vst [vmem:[%s752_s4 + $0xc8] sm:$0xff] %v417_v23  ;;  %vm355_vm13 = vcmp.ge.f32.partialorder %v249_v21, 0.0  ;;  %v388_v27 = vmul.f32 %v618_v28, %v249_v21 }
 0x102   :  { %451 = vst [vmem:[%s752_s4 + $0xd8] sm:$0xff] %v419_v24  ;;  %vm357_vm14 = vcmp.ge.f32.partialorder %v322_v22, 0.0  ;;  %v390_v29 = vmul.f32 %v618_v28, %v322_v22  ;;  %vm356_vm15 = vcmp.ge.f32.partialorder %v251_v25, 0.0  ;;  %v389_v30 = vmul.f32 %v618_v28, %v251_v25 }
 0x103   :  { %vm358_vm0 = vcmp.ge.f32.partialorder %v324_v26, 0.0  ;;  %v391_v31 = vmul.f32 %v618_v28, %v324_v26  ;;  %v420_v32 = vsel %vm355_vm13, %v249_v21, %v388_v27 }
 0x104   :  { %v422_v33 = vsel %vm357_vm14, %v322_v22, %v390_v29  ;;  %452 = vst [vmem:[%s752_s4 + $0xe0] sm:$0xff] %v420_v32  ;;  %v421_v34 = vsel %vm356_vm15, %v251_v25, %v389_v30 }
 0x105   :  { %454 = vst [vmem:[%s752_s4 + $0xf0] sm:$0xff] %v422_v33  ;;  %v423_v35 = vsel %vm358_vm0, %v324_v26, %v391_v31  ;;  %453 = vst [vmem:[%s752_s4 + $0xe8] sm:$0xff] %v421_v34 }
 0x106   :  { %455 = vst [vmem:[%s752_s4 + $0xf8] sm:$0xff] %v423_v35 }

// kernel: up_block_forward.4
= control target key start
LH: loop header
LB: loop body
LE: loop exit
PB: predicated region body
PF: predicated region fallthrough
CT: control target
= control target key end

     0   :  { %v744_v1 = vmov 0   ;;  %s1030_s3 = inlined_call_operand.vmem [shape: bf16[256,512], index: 3, kind: input, shape index: {}]   ;;  %s1031_s1 = inlined_call_operand.vmem [shape: bf16[16,256], index: 1, kind: input, shape index: {}]   ;;  %s1032_s2 = inlined_call_operand.vmem [shape: f32[16,1], index: 2, kind: input, shape index: {}]   ;;  %s1033_s4 = inlined_call_operand.vmem [shape: f32[16,512], index: 4, kind: input, shape index: {}]   ;;  %s1034_s0 = inlined_call_operand.<no memory space> [shape: f32[1], index: 0, kind: input, shape index: {}]   ;;  %s1035_s5 = inlined_call_operand.vmem [shape: f32[16,512], index: 5, kind: output, shape index: {}]  }
   0x1   :  { %v645_v0 = vld [vmem:[%s1030_s3 + $0x4] ss:$16 sps:$4 sm:$0xff]   ;;  %644 = vset.pattern.permute.xlu0 %v744_v1  ;;  %v647_v2 = vld [vmem:[%s1030_s3 + $0xc] ss:$16 sps:$4 sm:$0xff]   ;;  %v649_v3 = vld [vmem:[%s1030_s3] ss:$16 sps:$4 sm:$0xff]  }
   0x2   :  { %429 = vmatprep.subr.bf16.mxu0 %v645_v0  ;;  %v650_v4 = vld [vmem:[%s1030_s3 + $0x8] ss:$16 sps:$4 sm:$0xff]   ;;  %472 = vmatprep.subr.bf16.mxu1 %v647_v2  ;;  %v651_v5 = vld [vmem:[%s1030_s3 + $0x24] ss:$16 sps:$4 sm:$0xff]   ;;  %v653_v6 = vld [vmem:[%s1030_s3 + $0x2c] ss:$16 sps:$4 sm:$0xff]  }
   0x3   :  { %430 = vmatpush1.bf16.msra.mxu0 %v649_v3  ;;  %473 = vmatpush1.bf16.msra.mxu1 %v650_v4  ;;  %v655_v7 = vld [vmem:[%s1030_s3 + $0x20] ss:$16 sps:$4 sm:$0xff]   ;;  %v656_v8 = vld [vmem:[%s1030_s3 + $0x28] ss:$16 sps:$4 sm:$0xff]   ;;  %v657_v9 = vld [vmem:[%s1030_s3 + $0x44] ss:$16 sps:$4 sm:$0xff]  }
   0x4   :  { %431 = vmatprep.subr.bf16.mxu0 %v651_v5  ;;  %474 = vmatprep.subr.bf16.mxu1 %v653_v6  ;;  %v659_v10 = vld [vmem:[%s1030_s3 + $0x4c] ss:$16 sps:$4 sm:$0xff]   ;;  %v661_v11 = vld [vmem:[%s1030_s3 + $0x40] ss:$16 sps:$4 sm:$0xff]   ;;  %v662_v12 = vld [vmem:[%s1030_s3 + $0x48] ss:$16 sps:$4 sm:$0xff]  }
   0x5   :  { %v663_v13 = vld [vmem:[%s1030_s3 + $0x64] ss:$16 sps:$4 sm:$0xff]   ;;  %v665_v14 = vld [vmem:[%s1030_s3 + $0x6c] ss:$16 sps:$4 sm:$0xff]   ;;  %v667_v15 = vld [vmem:[%s1030_s3 + $0x60] ss:$16 sps:$4 sm:$0xff]  }
   0x6   :  { %v668_v16 = vld [vmem:[%s1030_s3 + $0x68] ss:$16 sps:$4 sm:$0xff]   ;;  %v669_v17 = vld [vmem:[%s1030_s3 + $0x84] ss:$16 sps:$4 sm:$0xff]   ;;  %v671_v18 = vld [vmem:[%s1030_s3 + $0x8c] ss:$16 sps:$4 sm:$0xff]  }
   0x7   :  { %432 = vmatpush1.bf16.msra.mxu0 %v655_v7  ;;  %475 = vmatpush1.bf16.msra.mxu1 %v656_v8  ;;  %v673_v19 = vld [vmem:[%s1030_s3 + $0x80] ss:$16 sps:$4 sm:$0xff]   ;;  %v674_v20 = vld [vmem:[%s1030_s3 + $0x88] ss:$16 sps:$4 sm:$0xff]   ;;  %v675_v21 = vld [vmem:[%s1030_s3 + $0xa4] ss:$16 sps:$4 sm:$0xff]  }
   0x8   :  { %433 = vmatprep.subr.bf16.mxu0 %v657_v9  ;;  %476 = vmatprep.subr.bf16.mxu1 %v659_v10  ;;  %v677_v22 = vld [vmem:[%s1030_s3 + $0xac] ss:$16 sps:$4 sm:$0xff]   ;;  %v679_v23 = vld [vmem:[%s1030_s3 + $0xa0] ss:$16 sps:$4 sm:$0xff]   ;;  %v680_v24 = vld [vmem:[%s1030_s3 + $0xa8] ss:$16 sps:$4 sm:$0xff]  }
   0x9   :  { %v681_v25 = vld [vmem:[%s1030_s3 + $0xc4] ss:$16 sps:$4 sm:$0xff]   ;;  %v683_v26 = vld [vmem:[%s1030_s3 + $0xcc] ss:$16 sps:$4 sm:$0xff]   ;;  %v685_v27 = vld [vmem:[%s1030_s3 + $0xc0] ss:$16 sps:$4 sm:$0xff]  }
   0xa   :  { %v686_v28 = vld [vmem:[%s1030_s3 + $0xc8] ss:$16 sps:$4 sm:$0xff]   ;;  %v687_v29 = vld [vmem:[%s1030_s3 + $0xe4] ss:$16 sps:$4 sm:$0xff]   ;;  %v689_v30 = vld [vmem:[%s1030_s3 + $0xec] ss:$16 sps:$4 sm:$0xff]  }
   0xb   :  { %434 = vmatpush1.bf16.msra.mxu0 %v661_v11  ;;  %477 = vmatpush1.bf16.msra.mxu1 %v662_v12  ;;  %v691_v31 = vld [vmem:[%s1030_s3 + $0xe0] ss:$16 sps:$4 sm:$0xff]   ;;  %v692_v32 = vld [vmem:[%s1030_s3 + $0xe8] ss:$16 sps:$4 sm:$0xff]   ;;  %v693_v33 = vld [vmem:[%s1030_s3 + $0x104] ss:$16 sps:$4 sm:$0xff]  }
   0xc   :  { %435 = vmatprep.subr.bf16.mxu0 %v663_v13  ;;  %478 = vmatprep.subr.bf16.mxu1 %v665_v14  ;;  %v695_v34 = vld [vmem:[%s1030_s3 + $0x10c] ss:$16 sps:$4 sm:$0xff]   ;;  %v697_v35 = vld [vmem:[%s1030_s3 + $0x100] ss:$16 sps:$4 sm:$0xff]   ;;  %v698_v36 = vld [vmem:[%s1030_s3 + $0x108] ss:$16 sps:$4 sm:$0xff]   ;;  %v524_v13 = vstv %s1034_s0 }
   0xd   :  { %v699_v37 = vld [vmem:[%s1030_s3 + $0x124] ss:$16 sps:$4 sm:$0xff]   ;;  %v701_v38 = vld [vmem:[%s1030_s3 + $0x12c] ss:$16 sps:$4 sm:$0xff]   ;;  %v703_v39 = vld [vmem:[%s1030_s3 + $0x120] ss:$16 sps:$4 sm:$0xff]  }
   0xe   :  { %v704_v40 = vld [vmem:[%s1030_s3 + $0x128] ss:$16 sps:$4 sm:$0xff]   ;;  %v705_v41 = vld [vmem:[%s1030_s3 + $0x144] ss:$16 sps:$4 sm:$0xff]   ;;  %v707_v42 = vld [vmem:[%s1030_s3 + $0x14c] ss:$16 sps:$4 sm:$0xff]  }
   0xf   :  { %436 = vmatpush1.bf16.msra.mxu0 %v667_v15  ;;  %479 = vmatpush1.bf16.msra.mxu1 %v668_v16  ;;  %v709_v43 = vld [vmem:[%s1030_s3 + $0x140] ss:$16 sps:$4 sm:$0xff]   ;;  %v710_v44 = vld [vmem:[%s1030_s3 + $0x148] ss:$16 sps:$4 sm:$0xff]   ;;  %v711_v45 = vld [vmem:[%s1030_s3 + $0x164] ss:$16 sps:$4 sm:$0xff]  }
  0x10   :  { %437 = vmatprep.subr.bf16.mxu0 %v669_v17  ;;  %480 = vmatprep.subr.bf16.mxu1 %v671_v18  ;;  %v713_v46 = vld [vmem:[%s1030_s3 + $0x16c] ss:$16 sps:$4 sm:$0xff]   ;;  %v715_v48 = vld [vmem:[%s1030_s3 + $0x160] ss:$16 sps:$4 sm:$0xff]   ;;  %v716_v49 = vld [vmem:[%s1030_s3 + $0x168] ss:$16 sps:$4 sm:$0xff]  }
  0x11   :  { %v743_v47 = vld [vmem:[%s1031_s1 + $0x4] ss:$8 sps:$4 sm:$0xff]   ;;  %v721_v53 = vld [vmem:[%s1030_s3 + $0x180] ss:$16 sps:$4 sm:$0xff]   ;;  %v722_v54 = vld [vmem:[%s1030_s3 + $0x188] ss:$16 sps:$4 sm:$0xff]  }
  0x12   :  { %v87_v50 = vld [vmem:[%s1032_s2] sm:$0xff]  ;;  %v719_v52 = vld [vmem:[%s1030_s3 + $0x18c] ss:$16 sps:$4 sm:$0xff]   ;;  %461 = vmatprep.mubr.bf16.mxu0 %v743_v47  ;;  %504 = vmatprep.mubr.bf16.mxu1 %v743_v47  ;;  %v728_v59 = vld [vmem:[%s1030_s3 + $0x1a8] ss:$16 sps:$4 sm:$0xff]  }
  0x13   :  { %438 = vmatpush1.bf16.msra.mxu0 %v673_v19  ;;  %481 = vmatpush1.bf16.msra.mxu1 %v674_v20  ;;  %v717_v51 = vld [vmem:[%s1030_s3 + $0x184] ss:$16 sps:$4 sm:$0xff]   ;;  %v88_v55 = vld [vmem:[%s1032_s2 + $0x8] sm:$0xff]  ;;  %v727_v58 = vld [vmem:[%s1030_s3 + $0x1a0] ss:$16 sps:$4 sm:$0xff]  }
  0x14   :  { %439 = vmatprep.subr.bf16.mxu0 %v675_v21  ;;  %482 = vmatprep.subr.bf16.mxu1 %v677_v22  ;;  %v723_v56 = vld [vmem:[%s1030_s3 + $0x1a4] ss:$16 sps:$4 sm:$0xff]   ;;  %v725_v57 = vld [vmem:[%s1030_s3 + $0x1ac] ss:$16 sps:$4 sm:$0xff]   ;;  %v733_v62 = vld [vmem:[%s1030_s3 + $0x1c0] ss:$16 sps:$4 sm:$0xff]  }
  0x15   :  { %91 = vperm.xlu0 %644, %v87_v50   ;;  %v729_v60 = vld [vmem:[%s1030_s3 + $0x1c4] ss:$16 sps:$4 sm:$0xff]   ;;  %v731_v61 = vld [vmem:[%s1030_s3 + $0x1cc] ss:$16 sps:$4 sm:$0xff]   ;;  %v734_v63 = vld [vmem:[%s1030_s3 + $0x1c8] ss:$16 sps:$4 sm:$0xff]  }
  0x16   :  { %v735_v0 = vld [vmem:[%s1030_s3 + $0x1e4] ss:$16 sps:$4 sm:$0xff]   ;;  %v737_v1 = vld [vmem:[%s1030_s3 + $0x1ec] ss:$16 sps:$4 sm:$0xff]   ;;  %v739_v2 = vld [vmem:[%s1030_s3 + $0x1e0] ss:$16 sps:$4 sm:$0xff]  }
  0x17   :  { %440 = vmatpush1.bf16.msra.mxu0 %v679_v23  ;;  %483 = vmatpush1.bf16.msra.mxu1 %v680_v24  ;;  %v740_v3 = vld [vmem:[%s1030_s3 + $0x1e8] ss:$16 sps:$4 sm:$0xff]   ;;  %v541_v5 = vld [vmem:[%s1033_s4] sm:$0xff]  ;;  %v543_v6 = vld [vmem:[%s1033_s4 + $0x10] sm:$0xff] }
  0x18   :  { %441 = vmatprep.subr.bf16.mxu0 %v681_v25  ;;  %484 = vmatprep.subr.bf16.mxu1 %v683_v26  ;;  %v741_v4 = vld [vmem:[%s1031_s1] ss:$8 sps:$4 sm:$0xff]   ;;  %v544_v9 = vld [vmem:[%s1033_s4 + $0x18] sm:$0xff]  ;;  %v547_v11 = vld [vmem:[%s1033_s4 + $0x30] sm:$0xff]  ;;  %v549_v14 = vmul.f32 -1.0, %v541_v5  ;;  %v551_v16 = vmul.f32 -1.0, %v543_v6 }
  0x19   :  { %96 = vperm.xlu0 %644, %v88_v55   ;;  %v542_v8 = vld [vmem:[%s1033_s4 + $0x8] sm:$0xff]  ;;  %v545_v10 = vld [vmem:[%s1033_s4 + $0x20] sm:$0xff]  ;;  %v552_v22 = vmul.f32 -1.0, %v544_v9 }
  0x1a   :  { %v550_v20 = vmul.f32 -1.0, %v542_v8  ;;  %v553_v26 = vmul.f32 -1.0, %v545_v10 }
  0x1b   :  { %442 = vmatpush1.bf16.msra.mxu0 %v685_v27  ;;  %485 = vmatpush1.bf16.msra.mxu1 %v686_v28  ;;  %v555_v28 = vmul.f32 -1.0, %v547_v11 }
  0x1c   :  { %443 = vmatprep.subr.bf16.mxu0 %v687_v29  ;;  %486 = vmatprep.subr.bf16.mxu1 %v689_v30 }
  0x1f   :  { %444 = vmatpush1.bf16.msra.mxu0 %v691_v31  ;;  %487 = vmatpush1.bf16.msra.mxu1 %v692_v32 }
  0x20   :  { %445 = vmatprep.subr.bf16.mxu0 %v693_v33  ;;  %488 = vmatprep.subr.bf16.mxu1 %v695_v34 }
  0x23   :  { %446 = vmatpush1.bf16.msra.mxu0 %v697_v35  ;;  %489 = vmatpush1.bf16.msra.mxu1 %v698_v36 }
  0x24   :  { %447 = vmatprep.subr.bf16.mxu0 %v699_v37  ;;  %490 = vmatprep.subr.bf16.mxu1 %v701_v38 }
  0x27   :  { %448 = vmatpush1.bf16.msra.mxu0 %v703_v39  ;;  %491 = vmatpush1.bf16.msra.mxu1 %v704_v40 }
  0x28   :  { %449 = vmatprep.subr.bf16.mxu0 %v705_v41  ;;  %492 = vmatprep.subr.bf16.mxu1 %v707_v42 }
  0x2b   :  { %450 = vmatpush1.bf16.msra.mxu0 %v709_v43  ;;  %493 = vmatpush1.bf16.msra.mxu1 %v710_v44  ;;  %v546_v44 = vld [vmem:[%s1033_s4 + $0x28] sm:$0xff] }
  0x2c   :  { %451 = vmatprep.subr.bf16.mxu0 %v711_v45  ;;  %494 = vmatprep.subr.bf16.mxu1 %v713_v46  ;;  %v548_v45 = vld [vmem:[%s1033_s4 + $0x38] sm:$0xff] }
  0x2f   :  { %452 = vmatpush1.bf16.msra.mxu0 %v715_v48  ;;  %495 = vmatpush1.bf16.msra.mxu1 %v716_v49 }
  0x30   :  { %453 = vmatprep.subr.bf16.mxu0 %v717_v51  ;;  %496 = vmatprep.subr.bf16.mxu1 %v719_v52 }
  0x33   :  { %454 = vmatpush1.bf16.msra.mxu0 %v721_v53  ;;  %497 = vmatpush1.bf16.msra.mxu1 %v722_v54  ;;  %v554_v53 = vmul.f32 -1.0, %v546_v44  ;;  %v556_v54 = vmul.f32 -1.0, %v548_v45 }
  0x34   :  { %455 = vmatprep.subr.bf16.mxu0 %v723_v56  ;;  %498 = vmatprep.subr.bf16.mxu1 %v725_v57 }
  0x37   :  { %456 = vmatpush1.bf16.msra.mxu0 %v727_v58  ;;  %499 = vmatpush1.bf16.msra.mxu1 %v728_v59 }
  0x38   :  { %457 = vmatprep.subr.bf16.mxu0 %v729_v60  ;;  %500 = vmatprep.subr.bf16.mxu1 %v731_v61 }
  0x3b   :  { %458 = vmatpush1.bf16.msra.mxu0 %v733_v62  ;;  %501 = vmatpush1.bf16.msra.mxu1 %v734_v63 }
  0x3c   :  { %459 = vmatprep.subr.bf16.mxu0 %v735_v0  ;;  %502 = vmatprep.subr.bf16.mxu1 %v737_v1 }
  0x3f   :  { %460 = vmatpush1.bf16.msra.mxu0 %v739_v2  ;;  %503 = vmatpush1.bf16.msra.mxu1 %v740_v3 }
  0x42   :  { %462 = vmatmul.mubr.bf16.vlgmr.msra.gmra.mrb[0].mxu0 %v741_v4  ;;  %505 = vmatmul.mubr.bf16.vlgmr.msra.gmra.mrb[0].mxu1 %v741_v4 }
  0x94   :  { %v92_v7 = vpop.permute.xlu0 %91 }
  0x98   :  { %v97_v33 = vpop.permute.xlu0 %96 }
 0x115   :  { %v463_v12 = vpop.f32.mrb[0].mxu0  ;;  %v506_v15 = vpop.f32.mrb[0].mxu1 }
 0x116   :  { %v464_v17 = vadd.f32 %v463_v12, %v92_v7  ;;  %v507_v18 = vadd.f32 %v506_v15, %v92_v7  ;;  %v465_v19 = vpop.f32.mrb[1].mxu0  ;;  %v508_v21 = vpop.f32.mrb[1].mxu1 }
 0x117   :  { %v466_v23 = vadd.f32 %v465_v19, %v92_v7  ;;  %v509_v24 = vadd.f32 %v508_v21, %v92_v7  ;;  %v467_v25 = vpop.f32.mrb[2].mxu0  ;;  %v510_v27 = vpop.f32.mrb[2].mxu1 }
 0x118   :  { %vm516_vm0 = vcmp.ge.f32.partialorder %v464_v17, 0.0  ;;  %v525_v29 = vmul.f32 %v524_v13, %v464_v17  ;;  %vm518_vm1 = vcmp.ge.f32.partialorder %v507_v18, 0.0  ;;  %v527_v30 = vmul.f32 %v524_v13, %v507_v18  ;;  %v469_v31 = vpop.f32.mrb[3].mxu0  ;;  %v512_v32 = vpop.f32.mrb[3].mxu1 }
 0x119   :  { %vm517_vm2 = vcmp.ge.f32.partialorder %v466_v23, 0.0  ;;  %v526_v34 = vmul.f32 %v524_v13, %v466_v23  ;;  %vm519_vm3 = vcmp.ge.f32.partialorder %v509_v24, 0.0  ;;  %v528_v35 = vmul.f32 %v524_v13, %v509_v24 }
 0x11a   :  { %v533_v36 = vsel %vm516_vm0, %v464_v17, %v525_v29  ;;  %v535_v37 = vsel %vm518_vm1, %v507_v18, %v527_v30  ;;  %v468_v38 = vadd.f32 %v467_v25, %v97_v33  ;;  %v511_v39 = vadd.f32 %v510_v27, %v97_v33 }
 0x11b   :  { %v557_v40 = vadd.f32 %v549_v14, %v533_v36  ;;  %v559_v41 = vadd.f32 %v551_v16, %v535_v37  ;;  %v534_v42 = vsel %vm517_vm2, %v466_v23, %v526_v34  ;;  %v536_v43 = vsel %vm519_vm3, %v509_v24, %v528_v35 }
 0x11c   :  { %v558_v46 = vadd.f32 %v550_v20, %v534_v42  ;;  %v560_v47 = vadd.f32 %v552_v22, %v536_v43  ;;  %vm520_vm4 = vcmp.ge.f32.partialorder %v468_v38, 0.0  ;;  %v529_v48 = vmul.f32 %v524_v13, %v468_v38 }
 0x11d   :  { %565 = vst [vmem:[%s1035_s5] sm:$0xff] %v557_v40  ;;  %567 = vst [vmem:[%s1035_s5 + $0x10] sm:$0xff] %v559_v41  ;;  %vm522_vm5 = vcmp.ge.f32.partialorder %v511_v39, 0.0  ;;  %v531_v49 = vmul.f32 %v524_v13, %v511_v39  ;;  %v470_v50 = vadd.f32 %v469_v31, %v97_v33  ;;  %v513_v51 = vadd.f32 %v512_v32, %v97_v33 }
 0x11e   :  { %566 = vst [vmem:[%s1035_s5 + $0x8] sm:$0xff] %v558_v46  ;;  %568 = vst [vmem:[%s1035_s5 + $0x18] sm:$0xff] %v560_v47  ;;  %v537_v52 = vsel %vm520_vm4, %v468_v38, %v529_v48 }
 0x11f   :  { %v561_v55 = vadd.f32 %v553_v26, %v537_v52  ;;  %v539_v56 = vsel %vm522_vm5, %v511_v39, %v531_v49  ;;  %vm521_vm6 = vcmp.ge.f32.partialorder %v470_v50, 0.0  ;;  %v530_v57 = vmul.f32 %v524_v13, %v470_v50 }
 0x120   :  { %v563_v58 = vadd.f32 %v555_v28, %v539_v56  ;;  %vm523_vm7 = vcmp.ge.f32.partialorder %v513_v51, 0.0  ;;  %v532_v59 = vmul.f32 %v524_v13, %v513_v51 }
 0x121   :  { %569 = vst [vmem:[%s1035_s5 + $0x20] sm:$0xff] %v561_v55  ;;  %v538_v60 = vsel %vm521_vm6, %v470_v50, %v530_v57 }
 0x122   :  { %571 = vst [vmem:[%s1035_s5 + $0x30] sm:$0xff] %v563_v58  ;;  %v562_v61 = vadd.f32 %v554_v53, %v538_v60  ;;  %v540_v62 = vsel %vm523_vm7, %v513_v51, %v532_v59 }
 0x123   :  { %v564_v63 = vadd.f32 %v556_v54, %v540_v62 }
 0x124   :  { %570 = vst [vmem:[%s1035_s5 + $0x28] sm:$0xff] %v562_v61 }
 0x125   :  { %572 = vst [vmem:[%s1035_s5 + $0x38] sm:$0xff] %v564_v63 }

// kernel: up_block_forward.5
= control target key start
LH: loop header
LB: loop body
LE: loop exit
PB: predicated region body
PF: predicated region fallthrough
CT: control target
= control target key end

     0   :  { %v576_v1 = vmov 0   ;;  %vm170_vm0 = vcmask 392192   ;;  %s937_s3 = inlined_call_operand.vmem [shape: bf16[48,512], index: 3, kind: input, shape index: {}]   ;;  %s938_s1 = inlined_call_operand.vmem [shape: bf16[64,48], index: 1, kind: input, shape index: {}]   ;;  %s939_s2 = inlined_call_operand.vmem [shape: f32[64,1], index: 2, kind: input, shape index: {}]   ;;  %s940_s0 = inlined_call_operand.<no memory space> [shape: f32[1], index: 0, kind: input, shape index: {}]   ;;  %s941_s4 = inlined_call_operand.vmem [shape: f32[64,512], index: 4, kind: input, shape index: {}]   ;;  %s942_s5 = inlined_call_operand.vmem [shape: f32[64,512], index: 5, kind: output, shape index: {}]  }
   0x1   :  { %v554_v0 = vld [vmem:[%s937_s3 + $0x4] ss:$16 sps:$4 sm:$0xff]   ;;  %215 = vmatprep.mubr.bf16.mxu0 %v576_v1  ;;  %288 = vmatprep.mubr.bf16.mxu1 %v576_v1  ;;  %v556_v2 = vld [vmem:[%s937_s3 + $0xc] ss:$16 sps:$4 sm:$0xff]   ;;  %v558_v3 = vld [vmem:[%s937_s3] ss:$16 sps:$4 sm:$0xff]   ;;  %v690_v28 = vstv %s940_s0 }
   0x2   :  { %552 = vset.pattern.permute.xlu0 %v576_v1  ;;  %553 = vset.pattern.permute.xlu1 %v576_v1  ;;  %v559_v4 = vld [vmem:[%s937_s3 + $0x8] ss:$16 sps:$4 sm:$0xff]   ;;  %v560_v5 = vld [vmem:[%s937_s3 + $0x24] ss:$16 sps:$4 sm:$0xff]   ;;  %v562_v6 = vld [vmem:[%s937_s3 + $0x2c] ss:$16 sps:$4 sm:$0xff]  }
   0x3   :  { %183 = vmatprep.subr.bf16.mxu0 %v554_v0  ;;  %256 = vmatprep.subr.bf16.mxu1 %v556_v2  ;;  %v564_v7 = vld [vmem:[%s937_s3 + $0x20] ss:$16 sps:$4 sm:$0xff]   ;;  %v565_v8 = vld [vmem:[%s937_s3 + $0x28] ss:$16 sps:$4 sm:$0xff]   ;;  %v566_v9 = vld [vmem:[%s937_s3 + $0x44] ss:$16 sps:$4 sm:$0xff]  }
   0x4   :  { %184 = vmatpush1.bf16.msra.mxu0 %v558_v3  ;;  %257 = vmatpush1.bf16.msra.mxu1 %v559_v4  ;;  %v568_v10 = vld [vmem:[%s937_s3 + $0x4c] ss:$16 sps:$4 sm:$0xff]   ;;  %v570_v11 = vld [vmem:[%s937_s3 + $0x40] ss:$16 sps:$4 sm:$0xff]   ;;  %v571_v12 = vld [vmem:[%s937_s3 + $0x48] ss:$16 sps:$4 sm:$0xff]  }
   0x5   :  { %185 = vmatprep.subr.bf16.mxu0 %v560_v5  ;;  %258 = vmatprep.subr.bf16.mxu1 %v562_v6  ;;  %v572_v13 = vld [vmem:[%s938_s1] sm:$0xff]   ;;  %v44_v15 = vld [vmem:[%s939_s2 + $0x10] sm:$0xff]  ;;  %v43_v16 = vld [vmem:[%s939_s2 + $0x8] sm:$0xff] }
   0x6   :  { %v42_v14 = vld [vmem:[%s939_s2] sm:$0xff]  ;;  %62 = vperm.xlu1 %553, %v44_v15   ;;  %v45_v17 = vld [vmem:[%s939_s2 + $0x18] sm:$0xff]  ;;  %v47_v18 = vld [vmem:[%s939_s2 + $0x28] sm:$0xff] }
   0x7   :  { %52 = vperm.xlu0 %552, %v42_v14   ;;  %v46_v19 = vld [vmem:[%s939_s2 + $0x20] sm:$0xff]  ;;  %v573_v20 = vld [vmem:[%s938_s1 + $0x8] sm:$0xff]   ;;  %v49_v21 = vld [vmem:[%s939_s2 + $0x38] sm:$0xff] }
   0x8   :  { %186 = vmatpush1.bf16.msra.mxu0 %v564_v7  ;;  %259 = vmatpush1.bf16.msra.mxu1 %v565_v8  ;;  %v48_v22 = vld [vmem:[%s939_s2 + $0x30] sm:$0xff]  ;;  %v575_v24 = vld [vmem:[%s938_s1 + $0x18] sm:$0xff]   ;;  %v427_v39 = vld [vmem:[%s941_s4] sm:$0xff] }
   0x9   :  { %187 = vmatprep.subr.bf16.mxu0 %v566_v9  ;;  %260 = vmatprep.subr.bf16.mxu1 %v568_v10  ;;  %v574_v23 = vld [vmem:[%s938_s1 + $0x10] sm:$0xff]   ;;  %v428_v45 = vld [vmem:[%s941_s4 + $0x8] sm:$0xff]  ;;  %v430_v47 = vld [vmem:[%s941_s4 + $0x18] sm:$0xff] }
   0xa   :  { %67 = vperm.xlu1 %553, %v45_v17   ;;  %v429_v41 = vld [vmem:[%s941_s4 + $0x10] sm:$0xff]  ;;  %v431_v59 = vld [vmem:[%s941_s4 + $0x20] sm:$0xff] }
   0xb   :  { %57 = vperm.xlu0 %552, %v43_v16   ;;  %v433_v62 = vld [vmem:[%s941_s4 + $0x30] sm:$0xff]  ;;  %v434_v16 = vld [vmem:[%s941_s4 + $0x38] sm:$0xff] }
   0xc   :  { %188 = vmatpush1.bf16.msra.mxu0 %v570_v11  ;;  %261 = vmatpush1.bf16.msra.mxu1 %v571_v12  ;;  %v432_v11 = vld [vmem:[%s941_s4 + $0x28] sm:$0xff] }
   0xe   :  { %77 = vperm.xlu1 %553, %v47_v18  }
   0xf   :  { %543 = vmatmul.mubr.msk.bf16.vlgmr.msra.gmra.mrb[0].mxu0 %vm170_vm0, %v572_v13  ;;  %547 = vmatmul.mubr.msk.bf16.vlgmr.msra.gmra.mrb[0].mxu1 %vm170_vm0, %v572_v13 }
  0x10   :  { %225 = vmatprep.mubr.bf16.mxu0 %v576_v1  ;;  %298 = vmatprep.mubr.bf16.mxu1 %v576_v1 }
  0x11   :  { %72 = vperm.xlu0 %552, %v46_v19  }
  0x12   :  { %87 = vperm.xlu1 %553, %v49_v21   ;;  %v435_v21 = vld [vmem:[%s941_s4 + $0x40] sm:$0xff] }
  0x15   :  { %82 = vperm.xlu0 %552, %v48_v22  }
  0x17   :  { %544 = vmatmul.mubr.msk.bf16.gmra.mrb[4].mxu0 %vm170_vm0, %v573_v20  ;;  %548 = vmatmul.mubr.msk.bf16.gmra.mrb[4].mxu1 %vm170_vm0, %v573_v20 }
  0x18   :  { %235 = vmatprep.mubr.bf16.mxu0 %v576_v1  ;;  %308 = vmatprep.mubr.bf16.mxu1 %v576_v1 }
  0x1f   :  { %545 = vmatmul.mubr.msk.bf16.gmra.mrb[8].mxu0 %vm170_vm0, %v574_v23  ;;  %549 = vmatmul.mubr.msk.bf16.gmra.mrb[8].mxu1 %vm170_vm0, %v574_v23  ;;  %v437_v23 = vld [vmem:[%s941_s4 + $0x50] sm:$0xff] }
  0x20   :  { %245 = vmatprep.mubr.bf16.mxu0 %v576_v1  ;;  %318 = vmatprep.mubr.bf16.mxu1 %v576_v1 }
  0x27   :  { %546 = vmatmul.mubr.msk.bf16.gmra.mrb[12].mxu0 %vm170_vm0, %v575_v24  ;;  %550 = vmatmul.mubr.msk.bf16.gmra.mrb[12].mxu1 %vm170_vm0, %v575_v24 }
  0x85   :  { %v63_v60 = vpop.permute.xlu1 %62 }
  0x86   :  { %v53_v25 = vpop.permute.xlu0 %52 }
  0x8a   :  { %v58_v26 = vpop.permute.xlu0 %57 }
  0xe2   :  { %v217_v27 = vpop.f32.mrb[0].mxu0  ;;  %v290_v29 = vpop.f32.mrb[0].mxu1 }
  0xe3   :  { %v218_v30 = vadd.f32 %v217_v27, %v53_v25  ;;  %v291_v31 = vadd.f32 %v290_v29, %v53_v25  ;;  %v219_v32 = vpop.f32.mrb[1].mxu0  ;;  %v292_v33 = vpop.f32.mrb[1].mxu1 }
  0xe4   :  { %v220_v34 = vadd.f32 %v219_v32, %v53_v25  ;;  %v293_v35 = vadd.f32 %v292_v33, %v53_v25  ;;  %v221_v36 = vpop.f32.mrb[2].mxu0  ;;  %v294_v37 = vpop.f32.mrb[2].mxu1 }
  0xe5   :  { %vm330_vm1 = vcmp.ge.f32.partialorder %v218_v30, 0.0  ;;  %v363_v38 = vmul.f32 %v690_v28, %v218_v30  ;;  %vm332_vm2 = vcmp.ge.f32.partialorder %v291_v31, 0.0  ;;  %v365_v40 = vmul.f32 %v690_v28, %v291_v31  ;;  %v223_v42 = vpop.f32.mrb[3].mxu0  ;;  %v296_v43 = vpop.f32.mrb[3].mxu1 }
  0xe6   :  { %vm331_vm3 = vcmp.ge.f32.partialorder %v220_v34, 0.0  ;;  %v364_v44 = vmul.f32 %v690_v28, %v220_v34  ;;  %vm333_vm4 = vcmp.ge.f32.partialorder %v293_v35, 0.0  ;;  %v366_v46 = vmul.f32 %v690_v28, %v293_v35 }
  0xe7   :  { %v395_v48 = vsel %vm330_vm1, %v218_v30, %v363_v38  ;;  %v397_v49 = vsel %vm332_vm2, %v291_v31, %v365_v40  ;;  %v222_v50 = vadd.f32 %v221_v36, %v58_v26  ;;  %v295_v51 = vadd.f32 %v294_v37, %v58_v26  ;;  %v436_v37 = vld [vmem:[%s941_s4 + $0x48] sm:$0xff]  ;;  %v758_v38 = vpop.permute.xlu0 %72  ;;  %v438_v40 = vld [vmem:[%s941_s4 + $0x58] sm:$0xff] }
  0xe8   :  { %v459_v52 = vadd.f32 %v427_v39, %v395_v48  ;;  %v461_v53 = vadd.f32 %v429_v41, %v397_v49  ;;  %v396_v54 = vsel %vm331_vm3, %v220_v34, %v364_v44  ;;  %v398_v55 = vsel %vm333_vm4, %v293_v35, %v366_v46 }
  0xe9   :  { %v460_v56 = vadd.f32 %v428_v45, %v396_v54  ;;  %v462_v57 = vadd.f32 %v430_v47, %v398_v55  ;;  %vm334_vm5 = vcmp.ge.f32.partialorder %v222_v50, 0.0  ;;  %v367_v58 = vmul.f32 %v690_v28, %v222_v50 }
  0xea   :  { %491 = vst [vmem:[%s942_s5] sm:$0xff] %v459_v52  ;;  %493 = vst [vmem:[%s942_s5 + $0x10] sm:$0xff] %v461_v53  ;;  %vm336_vm6 = vcmp.ge.f32.partialorder %v295_v51, 0.0  ;;  %v369_v61 = vmul.f32 %v690_v28, %v295_v51  ;;  %v224_v63 = vadd.f32 %v223_v42, %v58_v26  ;;  %v297_v0 = vadd.f32 %v296_v43, %v58_v26  ;;  %v227_v1 = vpop.f32.mrb[4].mxu0  ;;  %v300_v2 = vpop.f32.mrb[4].mxu1  ;;  %v439_v42 = vld [vmem:[%s941_s4 + $0x60] sm:$0xff] }
  0xeb   :  { %492 = vst [vmem:[%s942_s5 + $0x8] sm:$0xff] %v460_v56  ;;  %494 = vst [vmem:[%s942_s5 + $0x18] sm:$0xff] %v462_v57  ;;  %v399_v3 = vsel %vm334_vm5, %v222_v50, %v367_v58  ;;  %v228_v4 = vadd.f32 %v227_v1, %v63_v60  ;;  %v301_v5 = vadd.f32 %v300_v2, %v63_v60  ;;  %v229_v6 = vpop.f32.mrb[5].mxu0  ;;  %v302_v7 = vpop.f32.mrb[5].mxu1  ;;  %v442_v2 = vld [vmem:[%s941_s4 + $0x78] sm:$0xff] }
  0xec   :  { %v463_v8 = vadd.f32 %v431_v59, %v399_v3  ;;  %v401_v9 = vsel %vm336_vm6, %v295_v51, %v369_v61  ;;  %vm335_vm7 = vcmp.ge.f32.partialorder %v224_v63, 0.0  ;;  %v368_v10 = vmul.f32 %v690_v28, %v224_v63  ;;  %v231_v12 = vpop.f32.mrb[6].mxu0  ;;  %v304_v13 = vpop.f32.mrb[6].mxu1 }
  0xed   :  { %v465_v14 = vadd.f32 %v433_v62, %v401_v9  ;;  %vm337_vm8 = vcmp.ge.f32.partialorder %v297_v0, 0.0  ;;  %v370_v15 = vmul.f32 %v690_v28, %v297_v0  ;;  %vm338_vm9 = vcmp.ge.f32.partialorder %v228_v4, 0.0  ;;  %v233_v17 = vpop.f32.mrb[7].mxu0  ;;  %v306_v18 = vpop.f32.mrb[7].mxu1 }
  0xee   :  { %495 = vst [vmem:[%s942_s5 + $0x20] sm:$0xff] %v463_v8  ;;  %v400_v19 = vsel %vm335_vm7, %v224_v63, %v368_v10  ;;  %v371_v20 = vmul.f32 %v690_v28, %v228_v4  ;;  %vm340_vm10 = vcmp.ge.f32.partialorder %v301_v5, 0.0  ;;  %v373_v22 = vmul.f32 %v690_v28, %v301_v5  ;;  %v68_v26 = vpop.permute.xlu1 %67 }
  0xef   :  { %497 = vst [vmem:[%s942_s5 + $0x30] sm:$0xff] %v465_v14  ;;  %v464_v24 = vadd.f32 %v432_v11, %v400_v19  ;;  %v402_v25 = vsel %vm337_vm8, %v297_v0, %v370_v15  ;;  %v230_v27 = vadd.f32 %v229_v6, %v63_v60  ;;  %v303_v29 = vadd.f32 %v302_v7, %v63_v60  ;;  %v441_v60 = vld [vmem:[%s941_s4 + $0x70] sm:$0xff]  ;;  %v440_v0 = vld [vmem:[%s941_s4 + $0x68] sm:$0xff]  ;;  %v806_v14 = vpop.permute.xlu0 %82 }
  0xf0   :  { %v466_v30 = vadd.f32 %v434_v16, %v402_v25  ;;  %v403_v31 = vsel %vm338_vm9, %v228_v4, %v371_v20  ;;  %v405_v32 = vsel %vm340_vm10, %v301_v5, %v373_v22  ;;  %v232_v33 = vadd.f32 %v231_v12, %v68_v26  ;;  %v443_v5 = vld [vmem:[%s941_s4 + $0x80] sm:$0xff]  ;;  %v444_v20 = vld [vmem:[%s941_s4 + $0x88] sm:$0xff] }
  0xf1   :  { %496 = vst [vmem:[%s942_s5 + $0x28] sm:$0xff] %v464_v24  ;;  %v467_v34 = vadd.f32 %v435_v21, %v403_v31  ;;  %v469_v35 = vadd.f32 %v437_v23, %v405_v32  ;;  %vm339_vm11 = vcmp.ge.f32.partialorder %v230_v27, 0.0  ;;  %v372_v36 = vmul.f32 %v690_v28, %v230_v27 }
  0xf2   :  { %498 = vst [vmem:[%s942_s5 + $0x38] sm:$0xff] %v466_v30  ;;  %vm341_vm12 = vcmp.ge.f32.partialorder %v303_v29, 0.0  ;;  %v374_v39 = vmul.f32 %v690_v28, %v303_v29  ;;  %vm342_vm13 = vcmp.ge.f32.partialorder %v232_v33, 0.0  ;;  %v375_v41 = vmul.f32 %v690_v28, %v232_v33  ;;  %v237_v43 = vpop.f32.mrb[8].mxu0  ;;  %v310_v44 = vpop.f32.mrb[8].mxu1 }
  0xf3   :  { %499 = vst [vmem:[%s942_s5 + $0x40] sm:$0xff] %v467_v34  ;;  %501 = vst [vmem:[%s942_s5 + $0x50] sm:$0xff] %v469_v35  ;;  %v404_v45 = vsel %vm339_vm11, %v230_v27, %v372_v36  ;;  %v305_v46 = vadd.f32 %v304_v13, %v68_v26  ;;  %v234_v47 = vadd.f32 %v233_v17, %v68_v26  ;;  %v239_v49 = vpop.f32.mrb[9].mxu0  ;;  %v312_v50 = vpop.f32.mrb[9].mxu1 }
  0xf4   :  { %v307_v48 = vadd.f32 %v306_v18, %v68_v26  ;;  %v468_v51 = vadd.f32 %v436_v37, %v404_v45  ;;  %v406_v52 = vsel %vm341_vm12, %v303_v29, %v374_v39  ;;  %v407_v53 = vsel %vm342_vm13, %v232_v33, %v375_v41  ;;  %v241_v55 = vpop.f32.mrb[10].mxu0  ;;  %v314_v56 = vpop.f32.mrb[10].mxu1  ;;  %v445_v18 = vld [vmem:[%s941_s4 + $0x90] sm:$0xff]  ;;  %v446_v39 = vld [vmem:[%s941_s4 + $0x98] sm:$0xff] }
  0xf5   :  { %v238_v54 = vadd.f32 %v237_v43, %v758_v38  ;;  %v470_v57 = vadd.f32 %v438_v40, %v406_v52  ;;  %v471_v58 = vadd.f32 %v439_v42, %v407_v53  ;;  %vm344_vm14 = vcmp.ge.f32.partialorder %v305_v46, 0.0  ;;  %v243_v61 = vpop.f32.mrb[11].mxu0  ;;  %v316_v62 = vpop.f32.mrb[11].mxu1  ;;  %v447_v43 = vld [vmem:[%s941_s4 + $0xa0] sm:$0xff]  ;;  %v449_v45 = vld [vmem:[%s941_s4 + $0xb0] sm:$0xff]  ;;  %v450_v53 = vld [vmem:[%s941_s4 + $0xb8] sm:$0xff] }
  0xf6   :  { %v377_v59 = vmul.f32 %v690_v28, %v305_v46  ;;  %500 = vst [vmem:[%s942_s5 + $0x48] sm:$0xff] %v468_v51  ;;  %vm343_vm15 = vcmp.ge.f32.partialorder %v234_v47, 0.0  ;;  %v376_v63 = vmul.f32 %v690_v28, %v234_v47  ;;  %vm345_vm0 = vcmp.ge.f32.partialorder %v307_v48, 0.0  ;;  %v78_v11 = vpop.permute.xlu1 %77 }
  0xf7   :  { %v378_v1 = vmul.f32 %v690_v28, %v307_v48  ;;  %502 = vst [vmem:[%s942_s5 + $0x58] sm:$0xff] %v470_v57  ;;  %503 = vst [vmem:[%s942_s5 + $0x60] sm:$0xff] %v471_v58  ;;  %vm346_vm1 = vcmp.ge.f32.partialorder %v238_v54, 0.0  ;;  %v379_v4 = vmul.f32 %v690_v28, %v238_v54  ;;  %v311_v6 = vadd.f32 %v310_v44, %v758_v38 }
  0xf8   :  { %v409_v3 = vsel %vm344_vm14, %v305_v46, %v377_v59  ;;  %v408_v8 = vsel %vm343_vm15, %v234_v47, %v376_v63  ;;  %v240_v10 = vadd.f32 %v239_v49, %v758_v38  ;;  %v313_v23 = vadd.f32 %v312_v50, %v758_v38 }
  0xf9   :  { %v473_v7 = vadd.f32 %v441_v60, %v409_v3  ;;  %v410_v9 = vsel %vm345_vm0, %v307_v48, %v378_v1  ;;  %v472_v12 = vadd.f32 %v440_v0, %v408_v8  ;;  %v411_v15 = vsel %vm346_vm1, %v238_v54, %v379_v4  ;;  %v448_v48 = vld [vmem:[%s941_s4 + $0xa8] sm:$0xff] }
  0xfa   :  { %v474_v13 = vadd.f32 %v442_v2, %v410_v9  ;;  %vm348_vm2 = vcmp.ge.f32.partialorder %v311_v6, 0.0  ;;  %v475_v16 = vadd.f32 %v443_v5, %v411_v15  ;;  %v381_v17 = vmul.f32 %v690_v28, %v311_v6  ;;  %v247_v21 = vpop.f32.mrb[12].mxu0  ;;  %v320_v22 = vpop.f32.mrb[12].mxu1  ;;  %v453_v5 = vld [vmem:[%s941_s4 + $0xd0] sm:$0xff]  ;;  %v452_v9 = vld [vmem:[%s941_s4 + $0xc8] sm:$0xff] }
  0xfb   :  { %505 = vst [vmem:[%s942_s5 + $0x70] sm:$0xff] %v473_v7  ;;  %vm347_vm3 = vcmp.ge.f32.partialorder %v240_v10, 0.0  ;;  %v380_v19 = vmul.f32 %v690_v28, %v240_v10  ;;  %504 = vst [vmem:[%s942_s5 + $0x68] sm:$0xff] %v472_v12  ;;  %v242_v24 = vadd.f32 %v241_v55, %v78_v11  ;;  %v315_v25 = vadd.f32 %v314_v56, %v78_v11  ;;  %v249_v27 = vpop.f32.mrb[13].mxu0  ;;  %v322_v29 = vpop.f32.mrb[13].mxu1  ;;  %v454_v12 = vld [vmem:[%s941_s4 + $0xd8] sm:$0xff] }
  0xfc   :  { %506 = vst [vmem:[%s942_s5 + $0x78] sm:$0xff] %v474_v13  ;;  %v244_v26 = vadd.f32 %v243_v61, %v78_v11  ;;  %507 = vst [vmem:[%s942_s5 + $0x80] sm:$0xff] %v475_v16  ;;  %v413_v30 = vsel %vm348_vm2, %v311_v6, %v381_v17  ;;  %v317_v32 = vadd.f32 %v316_v62, %v78_v11  ;;  %v251_v34 = vpop.f32.mrb[14].mxu0  ;;  %v324_v35 = vpop.f32.mrb[14].mxu1  ;;  %vm349_vm4 = vcmp.ge.f32.partialorder %v313_v23, 0.0  ;;  %v451_v61 = vld [vmem:[%s941_s4 + $0xc0] sm:$0xff] }
  0xfd   :  { %v412_v31 = vsel %vm347_vm3, %v240_v10, %v380_v19  ;;  %v248_v33 = vadd.f32 %v247_v21, %v806_v14  ;;  %v477_v36 = vadd.f32 %v445_v18, %v413_v30  ;;  %v382_v38 = vmul.f32 %v690_v28, %v313_v23  ;;  %v835_v40 = vpop.f32.mrb[15].mxu0  ;;  %v837_v41 = vpop.f32.mrb[15].mxu1  ;;  %v457_v18 = vld [vmem:[%s941_s4 + $0xf0] sm:$0xff]  ;;  %v456_v30 = vld [vmem:[%s941_s4 + $0xe8] sm:$0xff] }
  0xfe   :  { %v476_v37 = vadd.f32 %v444_v20, %v412_v31  ;;  %vm350_vm5 = vcmp.ge.f32.partialorder %v242_v24, 0.0  ;;  %v383_v42 = vmul.f32 %v690_v28, %v242_v24  ;;  %vm352_vm6 = vcmp.ge.f32.partialorder %v315_v25, 0.0  ;;  %v88_v57 = vpop.permute.xlu1 %87 }
  0xff   :  { %v385_v44 = vmul.f32 %v690_v28, %v315_v25  ;;  %509 = vst [vmem:[%s942_s5 + $0x90] sm:$0xff] %v477_v36  ;;  %v414_v46 = vsel %vm349_vm4, %v313_v23, %v382_v38  ;;  %vm351_vm7 = vcmp.ge.f32.partialorder %v244_v26, 0.0  ;;  %v384_v47 = vmul.f32 %v690_v28, %v244_v26 }
 0x100   :  { %508 = vst [vmem:[%s942_s5 + $0x88] sm:$0xff] %v476_v37  ;;  %vm353_vm8 = vcmp.ge.f32.partialorder %v317_v32, 0.0  ;;  %v478_v49 = vadd.f32 %v446_v39, %v414_v46  ;;  %v415_v50 = vsel %vm350_vm5, %v242_v24, %v383_v42  ;;  %v386_v52 = vmul.f32 %v690_v28, %v317_v32 }
 0x101   :  { %v417_v51 = vsel %vm352_vm6, %v315_v25, %v385_v44  ;;  %v479_v54 = vadd.f32 %v447_v43, %v415_v50  ;;  %v416_v56 = vsel %vm351_vm7, %v244_v26, %v384_v47  ;;  %vm354_vm9 = vcmp.ge.f32.partialorder %v248_v33, 0.0 }
 0x102   :  { %v481_v55 = vadd.f32 %v449_v45, %v417_v51  ;;  %510 = vst [vmem:[%s942_s5 + $0x98] sm:$0xff] %v478_v49  ;;  %v480_v58 = vadd.f32 %v448_v48, %v416_v56  ;;  %v418_v59 = vsel %vm353_vm8, %v317_v32, %v386_v52  ;;  %v387_v60 = vmul.f32 %v690_v28, %v248_v33  ;;  %v458_v32 = vld [vmem:[%s941_s4 + $0xf8] sm:$0xff] }
 0x103   :  { %v321_v62 = vadd.f32 %v320_v22, %v806_v14  ;;  %511 = vst [vmem:[%s942_s5 + $0xa0] sm:$0xff] %v479_v54  ;;  %v482_v63 = vadd.f32 %v450_v53, %v418_v59  ;;  %v250_v0 = vadd.f32 %v249_v27, %v806_v14  ;;  %v323_v1 = vadd.f32 %v322_v29, %v806_v14  ;;  %v455_v14 = vld [vmem:[%s941_s4 + $0xe0] sm:$0xff] }
 0x104   :  { %513 = vst [vmem:[%s942_s5 + $0xb0] sm:$0xff] %v481_v55  ;;  %v252_v2 = vadd.f32 %v251_v34, %v88_v57  ;;  %512 = vst [vmem:[%s942_s5 + $0xa8] sm:$0xff] %v480_v58  ;;  %v419_v3 = vsel %vm354_vm9, %v248_v33, %v387_v60  ;;  %v325_v6 = vadd.f32 %v324_v35, %v88_v57 }
 0x105   :  { %vm356_vm10 = vcmp.ge.f32.partialorder %v321_v62, 0.0  ;;  %v389_v4 = vmul.f32 %v690_v28, %v321_v62  ;;  %514 = vst [vmem:[%s942_s5 + $0xb8] sm:$0xff] %v482_v63  ;;  %v483_v7 = vadd.f32 %v451_v61, %v419_v3  ;;  %vm355_vm11 = vcmp.ge.f32.partialorder %v250_v0, 0.0 }
 0x106   :  { %v388_v8 = vmul.f32 %v690_v28, %v250_v0  ;;  %vm357_vm12 = vcmp.ge.f32.partialorder %v323_v1, 0.0  ;;  %v390_v11 = vmul.f32 %v690_v28, %v323_v1  ;;  %vm358_vm13 = vcmp.ge.f32.partialorder %v252_v2, 0.0 }
 0x107   :  { %v421_v10 = vsel %vm356_vm10, %v321_v62, %v389_v4  ;;  %v391_v13 = vmul.f32 %v690_v28, %v252_v2  ;;  %515 = vst [vmem:[%s942_s5 + $0xc0] sm:$0xff] %v483_v7  ;;  %vm360_vm14 = vcmp.ge.f32.partialorder %v325_v6, 0.0  ;;  %v393_v17 = vmul.f32 %v690_v28, %v325_v6 }
 0x108   :  { %v485_v15 = vadd.f32 %v453_v5, %v421_v10  ;;  %v420_v16 = vsel %vm355_vm11, %v250_v0, %v388_v8  ;;  %v422_v20 = vsel %vm357_vm12, %v323_v1, %v390_v11  ;;  %v254_v22 = vadd.f32 %v835_v40, %v88_v57 }
 0x109   :  { %v484_v19 = vadd.f32 %v452_v9, %v420_v16  ;;  %v423_v21 = vsel %vm358_vm13, %v252_v2, %v391_v13  ;;  %v486_v23 = vadd.f32 %v454_v12, %v422_v20  ;;  %v425_v25 = vsel %vm360_vm14, %v325_v6, %v393_v17 }
 0x10a   :  { %517 = vst [vmem:[%s942_s5 + $0xd0] sm:$0xff] %v485_v15  ;;  %v487_v24 = vadd.f32 %v455_v14, %v423_v21  ;;  %v327_v26 = vadd.f32 %v837_v41, %v88_v57  ;;  %v489_v27 = vadd.f32 %v457_v18, %v425_v25  ;;  %vm359_vm15 = vcmp.ge.f32.partialorder %v254_v22, 0.0 }
 0x10b   :  { %516 = vst [vmem:[%s942_s5 + $0xc8] sm:$0xff] %v484_v19  ;;  %v392_v29 = vmul.f32 %v690_v28, %v254_v22  ;;  %518 = vst [vmem:[%s942_s5 + $0xd8] sm:$0xff] %v486_v23 }
 0x10c   :  { %519 = vst [vmem:[%s942_s5 + $0xe0] sm:$0xff] %v487_v24  ;;  %vm361_vm0 = vcmp.ge.f32.partialorder %v327_v26, 0.0  ;;  %v394_v31 = vmul.f32 %v690_v28, %v327_v26  ;;  %521 = vst [vmem:[%s942_s5 + $0xf0] sm:$0xff] %v489_v27 }
 0x10d   :  { %v424_v33 = vsel %vm359_vm15, %v254_v22, %v392_v29 }
 0x10e   :  { %v488_v34 = vadd.f32 %v456_v30, %v424_v33  ;;  %v426_v35 = vsel %vm361_vm0, %v327_v26, %v394_v31 }
 0x10f   :  { %v490_v36 = vadd.f32 %v458_v32, %v426_v35 }
 0x110   :  { %520 = vst [vmem:[%s942_s5 + $0xe8] sm:$0xff] %v488_v34 }
 0x111   :  { %522 = vst [vmem:[%s942_s5 + $0xf8] sm:$0xff] %v490_v36 }

</bundles_post_ra>
